<compile_context>
chip_gen: v6e
topology: v6e:2x2x1
jax: 0.10.0
libtpu: 0.0.40
codegen_flags: <defaults>
</compile_context>

<pallas_src>
from functools import reduce

import jax
import jax.numpy as jnp
from jax.experimental import pallas as pl
from jax.experimental.pallas import tpu as pltpu

HIDDEN = 512


def _round_up(n, m):
    return ((n + m - 1) // m) * m


# ----------------------------------------------------------------------------- kernel
def dueling_dqn_kernel(
    x_ref,                 # (Bt, F)           bf16
    w1_ref, b1_ref,        # (F, 512)   bf16 / (1, 512)   f32
    w2_ref, b2_ref,        # (512, 512) bf16 / (1, 512)   f32
    wh1_ref, bh1_ref,      # (512, 1024) bf16 / (1, 1024) f32   fused [adv | val] first layers
    wq_ref, bq_ref,        # (1024, A_pad) bf16 / (1, A_pad) f32  folded dueling-combine layer
    q_ref,                 # (Bt, A_pad)       f32
):
    x = x_ref[...]

    # fc trunk: Linear -> ReLU -> Linear -> ReLU   (bf16 MXU inputs, f32 accumulate)
    h = jnp.dot(x, w1_ref[...], preferred_element_type=jnp.float32) + b1_ref[...]
    h = jnp.maximum(h, 0.0)
    h = jnp.dot(h.astype(jnp.bfloat16), w2_ref[...],
                preferred_element_type=jnp.float32) + b2_ref[...]
    h = jnp.maximum(h, 0.0)

    # fused head first layers: one wide (512 -> 1024) matmul, then ReLU
    av = jnp.dot(h.astype(jnp.bfloat16), wh1_ref[...],
                 preferred_element_type=jnp.float32) + bh1_ref[...]
    av = jnp.maximum(av, 0.0)                      # (Bt, 1024) f32

    # final layer: advantage, value and the advantage-mean subtraction are all folded
    # into Wq / bq, so this single matmul directly produces the Q values (cols >=
    # num_actions are garbage/zero and sliced off in the wrapper).
    q_ref[...] = jnp.dot(av.astype(jnp.bfloat16), wq_ref[...],
                         preferred_element_type=jnp.float32) + bq_ref[...]


# ----------------------------------------------------------------------------- params
def init_params(key, flat_dim, num_actions, hidden=HIDDEN):
    """PyTorch-Linear-style init: U(-1/sqrt(fan_in), 1/sqrt(fan_in)).
    Weights stored as (in, out) (transposed vs. nn.Linear), biases as (1, out)."""
    def linear(k, fan_in, fan_out):
        kw, kb = jax.random.split(k)
        bound = 1.0 / jnp.sqrt(fan_in)
        w = jax.random.uniform(kw, (fan_in, fan_out), jnp.float32, -bound, bound)
        b = jax.random.uniform(kb, (1, fan_out), jnp.float32, -bound, bound)
        return w, b

    keys = jax.random.split(key, 6)
    w1, b1 = linear(keys[0], flat_dim, hidden)        # fc[0]
    w2, b2 = linear(keys[1], hidden, hidden)          # fc[2]
    wa1, ba1 = linear(keys[2], hidden, hidden)        # advantage[0]
    wa2, ba2 = linear(keys[3], hidden, num_actions)   # advantage[2]
    wv1, bv1 = linear(keys[4], hidden, hidden)        # value[0]
    wv2, bv2 = linear(keys[5], hidden, 1)             # value[2]
    return (w1, b1, w2, b2, wa1, ba1, wa2, ba2, wv1, bv1, wv2, bv2)


def prepare_params(params, num_actions, lane=128):
    """One-time param prep:
       * fuse the advantage/value first layers into one (512, 1024) matrix,
       * fold the value second layer AND the advantage-mean subtraction into a single
         (1024, A_pad) final matrix (zero-padded to a lane-dense output width),
       * cast weights to bf16, keep biases f32."""
    (w1, b1, w2, b2, wa1, ba1, wa2, ba2, wv1, bv1, wv2, bv2) = params
    a_pad = _round_up(num_actions, lane)

    wh1 = jnp.concatenate([wa1, wv1], axis=1)                       # (512, 1024)
    bh1 = jnp.concatenate([ba1, bv1], axis=1)                       # (1, 1024)

    # q[:, j] = a_part @ (wa2[:, j] - mean_k wa2[:, k]) + v_part @ wv2
    #           + (ba2[j] + bv2 - mean_k ba2[k])
    wq_a = wa2 - jnp.sum(wa2, axis=1, keepdims=True) / num_actions  # (512, A)
    wq_v = jnp.broadcast_to(wv2, (wv2.shape[0], num_actions))       # (512, A)
    wq = jnp.concatenate([wq_a, wq_v], axis=0)                      # (1024, A)
    bq = ba2 + bv2 - jnp.sum(ba2, axis=1, keepdims=True) / num_actions  # (1, A)
    wq = jnp.pad(wq, ((0, 0), (0, a_pad - num_actions)))            # lane-dense, zero cols
    bq = jnp.pad(bq, ((0, 0), (0, a_pad - num_actions)))

    bf = lambda a: a.astype(jnp.bfloat16)
    f32 = lambda a: a.astype(jnp.float32)
    prepped = (bf(w1), f32(b1), bf(w2), f32(b2), bf(wh1), f32(bh1), bf(wq), f32(bq))
    return prepped, a_pad


# ----------------------------------------------------------------------------- wrapper
def _batch_tiling(B, block_b=512, min_split=64):
    """Balanced, 16-aligned (bf16 sublane pack) batch tiles with minimal padding.
    For non-trivial batches use >= 2 tiles so the 'parallel' grid axis can shard
    across v7x's two TensorCores; tiny batches stay in a single tile."""
    if B <= min_split:
        n_tiles = 1
    else:
        n_tiles = max(2, pl.cdiv(B, block_b))
    bt = _round_up(pl.cdiv(B, n_tiles), 16)
    return bt, n_tiles * bt


def dueling_dqn_forward(state, prepped, a_pad, num_actions, block_b=512):
    B = state.shape[0]
    x = state.reshape(B, -1).astype(jnp.bfloat16)        # Flatten + single cast (glue, stays in JAX)
    flat = x.shape[1]

    bt, b_pad = _batch_tiling(B, block_b)
    if b_pad != B:
        x = jnp.pad(x, ((0, b_pad - B), (0, 0)))

    (w1, b1, w2, b2, wh1, bh1, wq, bq) = prepped
    h = HIDDEN

    def full(shape):  # weights/biases: whole-array block, constant index_map -> stays resident in VMEM
        return pl.BlockSpec(shape, lambda i: (0,) * len(shape))

    q_pad = pl.pallas_call(
        dueling_dqn_kernel,
        out_shape=jax.ShapeDtypeStruct((b_pad, a_pad), jnp.float32),
        grid_spec=pltpu.PrefetchScalarGridSpec(
            num_scalar_prefetch=0,
            grid=(b_pad // bt,),
            in_specs=[
                pl.BlockSpec((bt, flat), lambda i: (i, 0)),   # activations tiled over batch
                full((flat, h)), full((1, h)),                # w1, b1
                full((h, h)), full((1, h)),                   # w2, b2
                full((h, 2 * h)), full((1, 2 * h)),           # fused head layer 1
                full((2 * h, a_pad)), full((1, a_pad)),       # folded dueling-combine layer
            ],
            out_specs=pl.BlockSpec((bt, a_pad), lambda i: (i, 0)),
        ),
        compiler_params=pltpu.CompilerParams(
            dimension_semantics=("parallel",),   # batch tiles shard across v7x TensorCores
        ),
    )(x, w1, b1, w2, b2, wh1, bh1, wq, bq)

    return q_pad[:B, :num_actions]


# ----------------------------------------------------------------------------- references
def reference_forward_prepped(state, prepped, num_actions):
    """Mirrors the kernel math (bf16 weights/activations, f32 accumulation) in plain JAX."""
    (w1, b1, w2, b2, wh1, bh1, wq, bq) = prepped
    f32 = jnp.float32
    x = state.reshape(state.shape[0], -1).astype(jnp.bfloat16)
    h = jnp.maximum(jnp.dot(x, w1, preferred_element_type=f32) + b1, 0.0)
    h = jnp.maximum(jnp.dot(h.astype(jnp.bfloat16), w2, preferred_element_type=f32) + b2, 0.0)
    av = jnp.maximum(jnp.dot(h.astype(jnp.bfloat16), wh1, preferred_element_type=f32) + bh1, 0.0)
    q = jnp.dot(av.astype(jnp.bfloat16), wq, preferred_element_type=f32) + bq
    return q[:, :num_actions]


def reference_forward_f32(state, params):
    """Full-precision reference matching the original module semantics."""
    (w1, b1, w2, b2, wa1, ba1, wa2, ba2, wv1, bv1, wv2, bv2) = params
    x = state.reshape(state.shape[0], -1).astype(jnp.float32)
    h = jnp.maximum(x @ w1 + b1, 0.0)
    h = jnp.maximum(h @ w2 + b2, 0.0)
    adv = jnp.maximum(h @ wa1 + ba1, 0.0) @ wa2 + ba2
    val = jnp.maximum(h @ wv1 + bv1, 0.0) @ wv2 + bv2
    return adv + val - jnp.mean(adv, axis=1, keepdims=True)


# ----------------------------------------------------------------------------- main
if __name__ == "__main__":
    # Small shapes consistent with the module (use_conv=False): state_shape=(4,8,8), batch=2.
    # TODO(synk): the use_conv=True branch (Conv2d + cReLU + BatchNorm2d) is not implemented;
    # the module is instantiated here with use_conv=False, a valid constructor choice.
    state_shape = (4, 8, 8)
    num_actions = 64
    flat_dim = reduce(lambda a, b: a * b, state_shape)  # 256

    key = jax.random.PRNGKey(0)
    k_state, k_params, k_big = jax.random.split(key, 3)
    params = init_params(k_params, flat_dim, num_actions)
    prepped, a_pad = prepare_params(params, num_actions)

    # --- tiny inference-style batch (single tile) ---
    batch = 2
    state = jax.random.normal(k_state, (batch,) + state_shape, dtype=jnp.float32)
    q = jax.block_until_ready(dueling_dqn_forward(state, prepped, a_pad, num_actions))
    assert q.shape == (batch, num_actions)

    q_ref = reference_forward_prepped(state, prepped, num_actions)
    assert jnp.allclose(q, q_ref, atol=1e-3, rtol=1e-3), "mismatch vs bf16-mirrored reference"
    q_f32 = reference_forward_f32(state, params)
    assert jnp.allclose(q, q_f32, atol=1e-1), "mismatch vs f32 module reference"

    # --- larger batch exercising the multi-tile (padded, 2-tile) path ---
    batch_big = 100
    state_big = jax.random.normal(k_big, (batch_big,) + state_shape, dtype=jnp.float32)
    q_big = jax.block_until_ready(dueling_dqn_forward(state_big, prepped, a_pad, num_actions))
    assert q_big.shape == (batch_big, num_actions)

    q_big_ref = reference_forward_prepped(state_big, prepped, num_actions)
    assert jnp.allclose(q_big, q_big_ref, atol=1e-3, rtol=1e-3), "multi-tile mismatch vs bf16 reference"
    q_big_f32 = reference_forward_f32(state_big, params)
    assert jnp.allclose(q_big, q_big_f32, atol=1e-1), "multi-tile mismatch vs f32 reference"

    print("KERNEL_OK")
</pallas_src>

<mosaic_0001>
module attributes {stable_mosaic.version = 11 : i64} {
  func.func @dueling_dqn_kernel(%arg0: i32, %arg1: memref<16x256xbf16, #tpu.memory_space<vmem>>, %arg2: memref<256x512xbf16, #tpu.memory_space<vmem>>, %arg3: memref<1x512xf32, #tpu.memory_space<vmem>>, %arg4: memref<512x512xbf16, #tpu.memory_space<vmem>>, %arg5: memref<1x512xf32, #tpu.memory_space<vmem>>, %arg6: memref<512x1024xbf16, #tpu.memory_space<vmem>>, %arg7: memref<1x1024xf32, #tpu.memory_space<vmem>>, %arg8: memref<1024x128xbf16, #tpu.memory_space<vmem>>, %arg9: memref<1x128xf32, #tpu.memory_space<vmem>>, %arg10: memref<16x128xf32, #tpu.memory_space<vmem>>) attributes {dimension_semantics = [#tpu.dimension_semantics<parallel>], iteration_bounds = array<i64: 1>, scalar_prefetch = 0 : i64, scratch_operands = 0 : i64, tpu.core_type = #tpu.core_type<tc>, window_params = [{transform_indices = @transform_0, window_bounds = array<i64: 16, 256>}, {pipeline_mode = #tpu.pipeline_mode<synchronous>, transform_indices = @transform_1, window_bounds = array<i64: 256, 512>}, {pipeline_mode = #tpu.pipeline_mode<synchronous>, transform_indices = @transform_2, window_bounds = array<i64: 1, 512>}, {pipeline_mode = #tpu.pipeline_mode<synchronous>, transform_indices = @transform_3, window_bounds = array<i64: 512, 512>}, {pipeline_mode = #tpu.pipeline_mode<synchronous>, transform_indices = @transform_4, window_bounds = array<i64: 1, 512>}, {pipeline_mode = #tpu.pipeline_mode<synchronous>, transform_indices = @transform_5, window_bounds = array<i64: 512, 1024>}, {pipeline_mode = #tpu.pipeline_mode<synchronous>, transform_indices = @transform_6, window_bounds = array<i64: 1, 1024>}, {pipeline_mode = #tpu.pipeline_mode<synchronous>, transform_indices = @transform_7, window_bounds = array<i64: 1024, 128>}, {pipeline_mode = #tpu.pipeline_mode<synchronous>, transform_indices = @transform_8, window_bounds = array<i64: 1, 128>}, {transform_indices = @transform_9, window_bounds = array<i64: 16, 128>}]} {
    %c0 = arith.constant 0 : index
    %c0_0 = arith.constant 0 : index
    %0 = vector.load %arg1[%c0, %c0_0] : memref<16x256xbf16, #tpu.memory_space<vmem>>, vector<16x256xbf16>
    %c0_1 = arith.constant 0 : index
    %c0_2 = arith.constant 0 : index
    %1 = vector.load %arg2[%c0_1, %c0_2] : memref<256x512xbf16, #tpu.memory_space<vmem>>, vector<256x512xbf16>
    %cst = arith.constant dense<0.000000e+00> : vector<16x512xf32>
    %2 = tpu.matmul %0, %1, %cst {dimension_numbers = #tpu.dot_dimension_numbers<[1], [0], [0], [1], [0, 0, 1, 1], [], []>} : vector<16x256xbf16>, vector<256x512xbf16>, vector<16x512xf32> -> vector<16x512xf32>
    %c0_3 = arith.constant 0 : index
    %c0_4 = arith.constant 0 : index
    %3 = vector.load %arg3[%c0_3, %c0_4] : memref<1x512xf32, #tpu.memory_space<vmem>>, vector<1x512xf32>
    %4 = vector.broadcast %3 : vector<1x512xf32> to vector<16x512xf32>
    %5 = arith.addf %2, %4 : vector<16x512xf32>
    %cst_5 = arith.constant 0.000000e+00 : f32
    %6 = vector.broadcast %cst_5 : f32 to vector<16x512xf32>
    %7 = arith.maximumf %5, %6 : vector<16x512xf32>
    %8 = arith.truncf %7 : vector<16x512xf32> to vector<16x512xbf16>
    %c0_6 = arith.constant 0 : index
    %c0_7 = arith.constant 0 : index
    %9 = vector.load %arg4[%c0_6, %c0_7] : memref<512x512xbf16, #tpu.memory_space<vmem>>, vector<512x512xbf16>
    %cst_8 = arith.constant dense<0.000000e+00> : vector<16x512xf32>
    %10 = tpu.matmul %8, %9, %cst_8 {dimension_numbers = #tpu.dot_dimension_numbers<[1], [0], [0], [1], [0, 0, 1, 1], [], []>} : vector<16x512xbf16>, vector<512x512xbf16>, vector<16x512xf32> -> vector<16x512xf32>
    %c0_9 = arith.constant 0 : index
    %c0_10 = arith.constant 0 : index
    %11 = vector.load %arg5[%c0_9, %c0_10] : memref<1x512xf32, #tpu.memory_space<vmem>>, vector<1x512xf32>
    %12 = vector.broadcast %11 : vector<1x512xf32> to vector<16x512xf32>
    %13 = arith.addf %10, %12 : vector<16x512xf32>
    %cst_11 = arith.constant 0.000000e+00 : f32
    %14 = vector.broadcast %cst_11 : f32 to vector<16x512xf32>
    %15 = arith.maximumf %13, %14 : vector<16x512xf32>
    %16 = arith.truncf %15 : vector<16x512xf32> to vector<16x512xbf16>
    %c0_12 = arith.constant 0 : index
    %c0_13 = arith.constant 0 : index
    %17 = vector.load %arg6[%c0_12, %c0_13] : memref<512x1024xbf16, #tpu.memory_space<vmem>>, vector<512x1024xbf16>
    %cst_14 = arith.constant dense<0.000000e+00> : vector<16x1024xf32>
    %18 = tpu.matmul %16, %17, %cst_14 {dimension_numbers = #tpu.dot_dimension_numbers<[1], [0], [0], [1], [0, 0, 1, 1], [], []>} : vector<16x512xbf16>, vector<512x1024xbf16>, vector<16x1024xf32> -> vector<16x1024xf32>
    %c0_15 = arith.constant 0 : index
    %c0_16 = arith.constant 0 : index
    %19 = vector.load %arg7[%c0_15, %c0_16] : memref<1x1024xf32, #tpu.memory_space<vmem>>, vector<1x1024xf32>
    %20 = vector.broadcast %19 : vector<1x1024xf32> to vector<16x1024xf32>
    %21 = arith.addf %18, %20 : vector<16x1024xf32>
    %cst_17 = arith.constant 0.000000e+00 : f32
    %22 = vector.broadcast %cst_17 : f32 to vector<16x1024xf32>
    %23 = arith.maximumf %21, %22 : vector<16x1024xf32>
    %24 = arith.truncf %23 : vector<16x1024xf32> to vector<16x1024xbf16>
    %c0_18 = arith.constant 0 : index
    %c0_19 = arith.constant 0 : index
    %25 = vector.load %arg8[%c0_18, %c0_19] : memref<1024x128xbf16, #tpu.memory_space<vmem>>, vector<1024x128xbf16>
    %cst_20 = arith.constant dense<0.000000e+00> : vector<16x128xf32>
    %26 = tpu.matmul %24, %25, %cst_20 {dimension_numbers = #tpu.dot_dimension_numbers<[1], [0], [0], [1], [0, 0, 1, 1], [], []>} : vector<16x1024xbf16>, vector<1024x128xbf16>, vector<16x128xf32> -> vector<16x128xf32>
    %c0_21 = arith.constant 0 : index
    %c0_22 = arith.constant 0 : index
    %27 = vector.load %arg9[%c0_21, %c0_22] : memref<1x128xf32, #tpu.memory_space<vmem>>, vector<1x128xf32>
    %28 = vector.broadcast %27 : vector<1x128xf32> to vector<16x128xf32>
    %29 = arith.addf %26, %28 : vector<16x128xf32>
    %c0_23 = arith.constant 0 : index
    %c0_24 = arith.constant 0 : index
    %30 = vector.load %arg10[%c0_23, %c0_24] : memref<16x128xf32, #tpu.memory_space<vmem>>, vector<16x128xf32>
    tpu.vector_store %arg10[%c0_23, %c0_24], %29 {strides = array<i32>} : memref<16x128xf32, #tpu.memory_space<vmem>>, vector<16x128xf32>,
    return
  }
  func.func @transform_0(%arg0: i32) -> (i32, i32) {
    %c0_i32 = arith.constant 0 : i32
    %c0_i32_0 = arith.constant 0 : i32
    return %arg0, %c0_i32 : i32, i32
  }
  func.func @transform_1(%arg0: i32) -> (i32, i32) {
    %c0_i32 = arith.constant 0 : i32
    %c0_i32_0 = arith.constant 0 : i32
    %c0_i32_1 = arith.constant 0 : i32
    return %c0_i32, %c0_i32_0 : i32, i32
  }
  func.func @transform_2(%arg0: i32) -> (i32, i32) {
    %c0_i32 = arith.constant 0 : i32
    %c0_i32_0 = arith.constant 0 : i32
    %c0_i32_1 = arith.constant 0 : i32
    return %c0_i32, %c0_i32_0 : i32, i32
  }
  func.func @transform_3(%arg0: i32) -> (i32, i32) {
    %c0_i32 = arith.constant 0 : i32
    %c0_i32_0 = arith.constant 0 : i32
    %c0_i32_1 = arith.constant 0 : i32
    return %c0_i32, %c0_i32_0 : i32, i32
  }
  func.func @transform_4(%arg0: i32) -> (i32, i32) {
    %c0_i32 = arith.constant 0 : i32
    %c0_i32_0 = arith.constant 0 : i32
    %c0_i32_1 = arith.constant 0 : i32
    return %c0_i32, %c0_i32_0 : i32, i32
  }
  func.func @transform_5(%arg0: i32) -> (i32, i32) {
    %c0_i32 = arith.constant 0 : i32
    %c0_i32_0 = arith.constant 0 : i32
    %c0_i32_1 = arith.constant 0 : i32
    return %c0_i32, %c0_i32_0 : i32, i32
  }
  func.func @transform_6(%arg0: i32) -> (i32, i32) {
    %c0_i32 = arith.constant 0 : i32
    %c0_i32_0 = arith.constant 0 : i32
    %c0_i32_1 = arith.constant 0 : i32
    return %c0_i32, %c0_i32_0 : i32, i32
  }
  func.func @transform_7(%arg0: i32) -> (i32, i32) {
    %c0_i32 = arith.constant 0 : i32
    %c0_i32_0 = arith.constant 0 : i32
    %c0_i32_1 = arith.constant 0 : i32
    return %c0_i32, %c0_i32_0 : i32, i32
  }
  func.func @transform_8(%arg0: i32) -> (i32, i32) {
    %c0_i32 = arith.constant 0 : i32
    %c0_i32_0 = arith.constant 0 : i32
    %c0_i32_1 = arith.constant 0 : i32
    return %c0_i32, %c0_i32_0 : i32, i32
  }
  func.func @transform_9(%arg0: i32) -> (i32, i32) {
    %c0_i32 = arith.constant 0 : i32
    %c0_i32_0 = arith.constant 0 : i32
    return %arg0, %c0_i32 : i32, i32
  }
}

</mosaic_0001>

<bundles_post_ra>
// kernel: tpu_custom_call.1
= control target key start
LH: loop header
LB: loop body
LE: loop exit
PB: predicated region body
PF: predicated region fallthrough
CT: control target
= control target key end

     0   :  { %14 = vsyncpa [#allocation3], 0  ;;  %s5612_s0 = inlined_call_operand.hbm [shape: bf16[16,256], index: 0, kind: input, shape index: {}]   ;;  %s5613_s1 = inlined_call_operand.hbm [shape: bf16[256,512], index: 1, kind: input, shape index: {}]   ;;  %s5614_s2 = inlined_call_operand.hbm [shape: f32[1,512], index: 2, kind: input, shape index: {}]   ;;  %s5615_s3 = inlined_call_operand.hbm [shape: bf16[512,512], index: 3, kind: input, shape index: {}]   ;;  %s5616_s4 = inlined_call_operand.hbm [shape: f32[1,512], index: 4, kind: input, shape index: {}]   ;;  %s5617_s5 = inlined_call_operand.hbm [shape: bf16[512,1024], index: 5, kind: input, shape index: {}]   ;;  %s5618_s6 = inlined_call_operand.vmem [shape: f32[1,1024], index: 6, kind: input, shape index: {}]   ;;  %s5619_s7 = inlined_call_operand.hbm [shape: bf16[1024,128], index: 7, kind: input, shape index: {}]   ;;  %s5620_s8 = inlined_call_operand.vmem [shape: f32[1,128], index: 8, kind: input, shape index: {}]   ;;  %s5621_s9 = inlined_call_operand.hbm [shape: f32[16,128], index: 9, kind: output, shape index: {}]  }
   0x1   :  { %15 = vsyncpa [#allocation6], 0 }
   0x2   :  { %16 = vsyncpa [#allocation9], 0 }
   0x3   :  { %17 = vsyncpa [#allocation12], 0 }
   0x4   :  { %18 = vsyncpa [#allocation4], 0  ;;  %s5410_s30 = smov [#allocation5]  }
   0x5   :  { %s36_s10 = sshll.u32 %s5410_s30, 4  ;;  %s37_s10 = int_to_ptr.vmem [resolvable:$true] %s36_s10 }
   0x6   :  { %s5248_s11 = scalar_lea.vmem %s37_s10, 8192  ;;  %p5253_p1 = scmp.lt.s32.totalorder %s37_s10, %s37_s10 }
   0x7   :  { %p5249_p0 = scmp.ne.s32.totalorder %s37_s10, %s5248_s11  ;;  %p5254_p2 = scmp.lt.s32.totalorder %s5248_s11, %s5248_s11 }
   0x9   :  { %p5255_p3 = por %p5254_p2, %p5253_p1 }
   0xb   :  { %p5256_p4 = pnand %p5255_p3, %p5249_p0 }
   0xd   :  { %5259 = shalt.err (!%p5256_p4)
}
   0xe   :  { %s5411_s12 = smov 256   ;;  %s5412_s13 = smov 16  }
   0xf   :  { %42 = dma.hbm_to_vmem [thread:$0]  %s5613_s1, 8192, %s37_s10, [#allocation6], %s5411_s12, %s5411_s12, %s5412_s13  }
  0x10   :  { %s5413_s16 = smov [#allocation8]   ;;  %s5414_s18 = smov [#allocation11]  }
  0x11   :  { %s58_s17 = sshll.u32 %s5413_s16, 4  ;;  %s80_s19 = sshll.u32 %s5414_s18, 4  ;;  %s59_s17 = int_to_ptr.vmem [resolvable:$true] %s58_s17  ;;  %s81_s19 = int_to_ptr.vmem [resolvable:$true] %s80_s19 }
  0x12   :  { %s5268_s20 = scalar_lea.vmem %s59_s17, 16384  ;;  %p5273_p6 = scmp.lt.s32.totalorder %s59_s17, %s59_s17 }
  0x13   :  { %p5269_p5 = scmp.ne.s32.totalorder %s59_s17, %s5268_s20  ;;  %p5274_p7 = scmp.lt.s32.totalorder %s5268_s20, %s5268_s20 }
  0x15   :  { %p5275_p8 = por %p5274_p7, %p5273_p6 }
  0x17   :  { %p5276_p9 = pnand %p5275_p8, %p5269_p5 }
  0x19   :  { %5279 = shalt.err (!%p5276_p9)
}
  0x1a   :  { %64 = dma.hbm_to_vmem [thread:$0]  %s5615_s3, 16384, %s59_s17, [#allocation9], %s5411_s12, %s5411_s12, %s5412_s13  }
  0x1b   :  { %s5288_s23 = scalar_lea.vmem %s81_s19, 32768  ;;  %p5293_p11 = scmp.lt.s32.totalorder %s81_s19, %s81_s19 }
  0x1c   :  { %p5289_p10 = scmp.ne.s32.totalorder %s81_s19, %s5288_s23  ;;  %p5294_p12 = scmp.lt.s32.totalorder %s5288_s23, %s5288_s23 }
  0x1e   :  { %p5295_p13 = por %p5294_p12, %p5293_p11 }
  0x20   :  { %p5296_p0 = pnand %p5295_p13, %p5289_p10 }
  0x22   :  { %5299 = shalt.err (!%p5296_p0)
}
  0x23   :  { %s5415_s1 = smov 512   ;;  %s5416_s24 = smov 32  }
  0x24   :  { %86 = dma.hbm_to_vmem [thread:$0]  %s5617_s5, 32768, %s81_s19, [#allocation12], %s5415_s1, %s5415_s1, %s5416_s24  }
  0x25   :  { %s5417_s27 = smov [#allocation2]  }
  0x26   :  { %s24_s28 = sshll.u32 %s5417_s27, 4  ;;  %s25_s28 = int_to_ptr.vmem [resolvable:$true] %s24_s28 }
  0x27   :  { %s5308_s29 = scalar_lea.vmem %s25_s28, 256  ;;  %p5313_p2 = scmp.lt.s32.totalorder %s25_s28, %s25_s28 }
  0x28   :  { %p5309_p1 = scmp.ne.s32.totalorder %s25_s28, %s5308_s29  ;;  %p5314_p3 = scmp.lt.s32.totalorder %s5308_s29, %s5308_s29 }
  0x2a   :  { %p5315_p4 = por %p5314_p3, %p5313_p2 }
  0x2c   :  { %p5316_p5 = pnand %p5315_p4, %p5309_p1 }
  0x2e   :  { %5319 = shalt.err (!%p5316_p5)
}
  0x2f   :  { %s5418_s3 = smov 128   ;;  %s5419_s30 = smov 8  }
  0x30   :  { %30 = dma.hbm_to_vmem [thread:$0]  %s5612_s0, 256, %s25_s28, [#allocation3], %s5418_s3, %s5418_s3, %s5419_s30  }
  0x31   :  { %s5420_s5 = smov [#allocation7]   ;;  %s5421_s13 = smov [#allocation10]  }
  0x32   :  { %s49_s12 = sshll.u32 %s5420_s5, 4  ;;  %s71_s14 = sshll.u32 %s5421_s13, 4  ;;  %s50_s12 = int_to_ptr.vmem [resolvable:$true] %s49_s12  ;;  %s72_s14 = int_to_ptr.vmem [resolvable:$true] %s71_s14 }
  0x33   :  { %s5328_s15 = scalar_lea.vmem %s50_s12, 64  ;;  %p5333_p7 = scmp.lt.s32.totalorder %s50_s12, %s50_s12 }
  0x34   :  { %p5329_p6 = scmp.ne.s32.totalorder %s50_s12, %s5328_s15  ;;  %p5334_p8 = scmp.lt.s32.totalorder %s5328_s15, %s5328_s15 }
  0x36   :  { %p5335_p9 = por %p5334_p8, %p5333_p7 }
  0x38   :  { %p5336_p10 = pnand %p5335_p9, %p5329_p6 }
  0x3a   :  { %5339 = shalt.err (!%p5336_p10)
}
  0x3b   :  { %52 = dma.hbm_to_vmem [thread:$0]  %s5614_s2, 64, %s50_s12, [#allocation6]  }
  0x3c   :  { %s5348_s18 = scalar_lea.vmem %s72_s14, 64  ;;  %p5353_p12 = scmp.lt.s32.totalorder %s72_s14, %s72_s14 }
  0x3d   :  { %p5349_p11 = scmp.ne.s32.totalorder %s72_s14, %s5348_s18  ;;  %p5354_p13 = scmp.lt.s32.totalorder %s5348_s18, %s5348_s18 }
  0x3f   :  { %p5355_p0 = por %p5354_p13, %p5353_p12 }
  0x41   :  { %p5356_p1 = pnand %p5355_p0, %p5349_p11 }
  0x43   :  { %5359 = shalt.err (!%p5356_p1)
}
  0x44   :  { %74 = dma.hbm_to_vmem [thread:$0]  %s5616_s4, 64, %s72_s14, [#allocation9]  }
  0x45   :  { %s5422_s20 = smov [#allocation13]  }
  0x46   :  { %s94_s21 = sshll.u32 %s5422_s20, 4  ;;  %s95_s21 = int_to_ptr.vmem [resolvable:$true] %s94_s21 }
  0x47   :  { %s5368_s22 = scalar_lea.vmem %s95_s21, 8192  ;;  %p5373_p3 = scmp.lt.s32.totalorder %s95_s21, %s95_s21 }
  0x48   :  { %p5369_p2 = scmp.ne.s32.totalorder %s95_s21, %s5368_s22  ;;  %p5374_p4 = scmp.lt.s32.totalorder %s5368_s22, %s5368_s22 }
  0x4a   :  { %p5375_p5 = por %p5374_p4, %p5373_p3 }
  0x4c   :  { %p5376_p6 = pnand %p5375_p5, %p5369_p2 }
  0x4e   :  { %5379 = shalt.err (!%p5376_p6)
}
  0x4f   :  { %s5423_s2 = smov 64   ;;  %s5424_s23 = smov 4  }
  0x50   :  { %100 = dma.hbm_to_vmem [thread:$0]  %s5619_s7, 8192, %s95_s21, [#allocation12], %s5423_s2, %s5423_s2, %s5424_s23  }
  0x51   :  { %5400 = dma.done.wait [#allocation3], 256  }
  0x52   :  { %5401 = vsyncadd [#allocation3], 4294967040 }
  0x53   :  { %5402 = dma.done.wait [#allocation6], 8256  }
  0x54   :  { %5403 = vsyncadd [#allocation6], 4294959040 }
  0x55   :  { %5404 = dma.done.wait [#allocation9], 16448  }
  0x56   :  { %5405 = vsyncadd [#allocation9], 4294950848 }
  0x57   :  { %5406 = dma.done.wait [#allocation12], 40960  }
  0x58   :  { %5407 = vsyncadd [#allocation12], 4294926336  ;;  %v4885_v0 = vld [vmem:[#allocation5 + $0xe4] ss:$16 sps:$4 sm:$0xff]   ;;  %v4887_v1 = vld [vmem:[#allocation5 + $0xec] ss:$16 sps:$4 sm:$0xff]  }
  0x59   :  { %543 = vmatprep.subr.bf16.mxu0 %v4885_v0  ;;  %v4889_v2 = vld [vmem:[#allocation5 + $0xe0] ss:$16 sps:$4 sm:$0xff]   ;;  %v4890_v3 = vld [vmem:[#allocation5 + $0xe8] ss:$16 sps:$4 sm:$0xff]   ;;  %586 = vmatprep.subr.bf16.mxu1 %v4887_v1  ;;  %v4891_v4 = vld [vmem:[#allocation5 + $0xc4] ss:$16 sps:$4 sm:$0xff]  }
  0x5a   :  { %544 = vmatpush1.bf16.msra.mxu0 %v4889_v2  ;;  %587 = vmatpush1.bf16.msra.mxu1 %v4890_v3  ;;  %v4893_v5 = vld [vmem:[#allocation5 + $0xcc] ss:$16 sps:$4 sm:$0xff]   ;;  %v4895_v6 = vld [vmem:[#allocation5 + $0xc0] ss:$16 sps:$4 sm:$0xff]   ;;  %v4896_v7 = vld [vmem:[#allocation5 + $0xc8] ss:$16 sps:$4 sm:$0xff]  }
  0x5b   :  { %545 = vmatprep.subr.bf16.mxu0 %v4891_v4  ;;  %588 = vmatprep.subr.bf16.mxu1 %v4893_v5  ;;  %v4897_v8 = vld [vmem:[#allocation5 + $0xa4] ss:$16 sps:$4 sm:$0xff]   ;;  %v4899_v9 = vld [vmem:[#allocation5 + $0xac] ss:$16 sps:$4 sm:$0xff]   ;;  %v4901_v10 = vld [vmem:[#allocation5 + $0xa0] ss:$16 sps:$4 sm:$0xff]  }
  0x5c   :  { %v4902_v11 = vld [vmem:[#allocation5 + $0xa8] ss:$16 sps:$4 sm:$0xff]   ;;  %v4903_v12 = vld [vmem:[#allocation5 + $0x84] ss:$16 sps:$4 sm:$0xff]   ;;  %v4905_v13 = vld [vmem:[#allocation5 + $0x8c] ss:$16 sps:$4 sm:$0xff]  }
  0x5d   :  { %v4907_v14 = vld [vmem:[#allocation5 + $0x80] ss:$16 sps:$4 sm:$0xff]   ;;  %v4908_v15 = vld [vmem:[#allocation5 + $0x88] ss:$16 sps:$4 sm:$0xff]   ;;  %v4909_v16 = vld [vmem:[#allocation5 + $0x64] ss:$16 sps:$4 sm:$0xff]  }
  0x5e   :  { %546 = vmatpush1.bf16.msra.mxu0 %v4895_v6  ;;  %589 = vmatpush1.bf16.msra.mxu1 %v4896_v7  ;;  %v4911_v17 = vld [vmem:[#allocation5 + $0x6c] ss:$16 sps:$4 sm:$0xff]   ;;  %v4913_v18 = vld [vmem:[#allocation5 + $0x60] ss:$16 sps:$4 sm:$0xff]   ;;  %v4914_v19 = vld [vmem:[#allocation5 + $0x68] ss:$16 sps:$4 sm:$0xff]  }
  0x5f   :  { %547 = vmatprep.subr.bf16.mxu0 %v4897_v8  ;;  %590 = vmatprep.subr.bf16.mxu1 %v4899_v9  ;;  %v4915_v20 = vld [vmem:[#allocation5 + $0x44] ss:$16 sps:$4 sm:$0xff]   ;;  %v4917_v21 = vld [vmem:[#allocation5 + $0x4c] ss:$16 sps:$4 sm:$0xff]   ;;  %v4919_v22 = vld [vmem:[#allocation5 + $0x40] ss:$16 sps:$4 sm:$0xff]  }
  0x60   :  { %v4920_v23 = vld [vmem:[#allocation5 + $0x48] ss:$16 sps:$4 sm:$0xff]   ;;  %v4921_v24 = vld [vmem:[#allocation5 + $0x24] ss:$16 sps:$4 sm:$0xff]   ;;  %v4923_v25 = vld [vmem:[#allocation5 + $0x2c] ss:$16 sps:$4 sm:$0xff]  }
  0x61   :  { %v4925_v26 = vld [vmem:[#allocation5 + $0x20] ss:$16 sps:$4 sm:$0xff]   ;;  %v4926_v27 = vld [vmem:[#allocation5 + $0x28] ss:$16 sps:$4 sm:$0xff]   ;;  %v4927_v28 = vld [vmem:[#allocation5 + $0x4] ss:$16 sps:$4 sm:$0xff]  }
  0x62   :  { %548 = vmatpush1.bf16.msra.mxu0 %v4901_v10  ;;  %591 = vmatpush1.bf16.msra.mxu1 %v4902_v11  ;;  %v4929_v29 = vld [vmem:[#allocation5 + $0xc] ss:$16 sps:$4 sm:$0xff]   ;;  %v4931_v30 = vld [vmem:[#allocation5] ss:$16 sps:$4 sm:$0xff]   ;;  %v4932_v31 = vld [vmem:[#allocation5 + $0x8] ss:$16 sps:$4 sm:$0xff]  }
  0x63   :  { %549 = vmatprep.subr.bf16.mxu0 %v4903_v12  ;;  %592 = vmatprep.subr.bf16.mxu1 %v4905_v13  ;;  %v4933_v32 = vld [vmem:[#allocation5 + $0x1e4] ss:$16 sps:$4 sm:$0xff]   ;;  %v4935_v33 = vld [vmem:[#allocation5 + $0x1ec] ss:$16 sps:$4 sm:$0xff]   ;;  %v4937_v34 = vld [vmem:[#allocation5 + $0x1e0] ss:$16 sps:$4 sm:$0xff]  }
  0x64   :  { %v4938_v35 = vld [vmem:[#allocation5 + $0x1e8] ss:$16 sps:$4 sm:$0xff]   ;;  %v4939_v36 = vld [vmem:[#allocation5 + $0x1c4] ss:$16 sps:$4 sm:$0xff]   ;;  %v4941_v37 = vld [vmem:[#allocation5 + $0x1cc] ss:$16 sps:$4 sm:$0xff]  }
  0x65   :  { %v4943_v38 = vld [vmem:[#allocation5 + $0x1c0] ss:$16 sps:$4 sm:$0xff]   ;;  %v4944_v39 = vld [vmem:[#allocation5 + $0x1c8] ss:$16 sps:$4 sm:$0xff]   ;;  %v4945_v40 = vld [vmem:[#allocation5 + $0x1a4] ss:$16 sps:$4 sm:$0xff]  }
  0x66   :  { %550 = vmatpush1.bf16.msra.mxu0 %v4907_v14  ;;  %593 = vmatpush1.bf16.msra.mxu1 %v4908_v15  ;;  %v4947_v41 = vld [vmem:[#allocation5 + $0x1ac] ss:$16 sps:$4 sm:$0xff]   ;;  %v4949_v42 = vld [vmem:[#allocation5 + $0x1a0] ss:$16 sps:$4 sm:$0xff]   ;;  %v4950_v43 = vld [vmem:[#allocation5 + $0x1a8] ss:$16 sps:$4 sm:$0xff]  }
  0x67   :  { %551 = vmatprep.subr.bf16.mxu0 %v4909_v16  ;;  %594 = vmatprep.subr.bf16.mxu1 %v4911_v17  ;;  %v4951_v44 = vld [vmem:[#allocation5 + $0x184] ss:$16 sps:$4 sm:$0xff]   ;;  %v4953_v45 = vld [vmem:[#allocation5 + $0x18c] ss:$16 sps:$4 sm:$0xff]   ;;  %v4955_v46 = vld [vmem:[#allocation5 + $0x180] ss:$16 sps:$4 sm:$0xff]  }
  0x68   :  { %v4956_v47 = vld [vmem:[#allocation5 + $0x188] ss:$16 sps:$4 sm:$0xff]   ;;  %v4983_v48 = vld [vmem:[#allocation2 + $0x4] ss:$8 sps:$4 sm:$0xff]   ;;  %v4961_v51 = vld [vmem:[#allocation5 + $0x160] ss:$16 sps:$4 sm:$0xff]  }
  0x69   :  { %v4957_v49 = vld [vmem:[#allocation5 + $0x164] ss:$16 sps:$4 sm:$0xff]   ;;  %v4959_v50 = vld [vmem:[#allocation5 + $0x16c] ss:$16 sps:$4 sm:$0xff]   ;;  %575 = vmatprep.mubr.bf16.mxu0 %v4983_v48  ;;  %618 = vmatprep.mubr.bf16.mxu1 %v4983_v48  ;;  %v4962_v52 = vld [vmem:[#allocation5 + $0x168] ss:$16 sps:$4 sm:$0xff]  }
  0x6a   :  { %552 = vmatpush1.bf16.msra.mxu0 %v4913_v18  ;;  %595 = vmatpush1.bf16.msra.mxu1 %v4914_v19  ;;  %v4963_v53 = vld [vmem:[#allocation5 + $0x144] ss:$16 sps:$4 sm:$0xff]   ;;  %v4965_v54 = vld [vmem:[#allocation5 + $0x14c] ss:$16 sps:$4 sm:$0xff]   ;;  %v4967_v55 = vld [vmem:[#allocation5 + $0x140] ss:$16 sps:$4 sm:$0xff]  }
  0x6b   :  { %553 = vmatprep.subr.bf16.mxu0 %v4915_v20  ;;  %596 = vmatprep.subr.bf16.mxu1 %v4917_v21  ;;  %v4968_v56 = vld [vmem:[#allocation5 + $0x148] ss:$16 sps:$4 sm:$0xff]   ;;  %v4969_v57 = vld [vmem:[#allocation5 + $0x124] ss:$16 sps:$4 sm:$0xff]   ;;  %v4971_v58 = vld [vmem:[#allocation5 + $0x12c] ss:$16 sps:$4 sm:$0xff]  }
  0x6c   :  { %v4973_v59 = vld [vmem:[#allocation5 + $0x120] ss:$16 sps:$4 sm:$0xff]   ;;  %v4974_v60 = vld [vmem:[#allocation5 + $0x128] ss:$16 sps:$4 sm:$0xff]   ;;  %v4975_v61 = vld [vmem:[#allocation5 + $0x104] ss:$16 sps:$4 sm:$0xff]  }
  0x6d   :  { %v4977_v62 = vld [vmem:[#allocation5 + $0x10c] ss:$16 sps:$4 sm:$0xff]   ;;  %v4979_v63 = vld [vmem:[#allocation5 + $0x100] ss:$16 sps:$4 sm:$0xff]   ;;  %v4980_v0 = vld [vmem:[#allocation5 + $0x108] ss:$16 sps:$4 sm:$0xff]  }
  0x6e   :  { %554 = vmatpush1.bf16.msra.mxu0 %v4919_v22  ;;  %597 = vmatpush1.bf16.msra.mxu1 %v4920_v23  ;;  %v4986_v1 = vld [vmem:[#allocation8 + $0xe4] ss:$16 sps:$4 sm:$0xff]   ;;  %v4984_v4 = vld [vmem:[#allocation8 + $0xe0] ss:$16 sps:$4 sm:$0xff]  }
  0x6f   :  { %555 = vmatprep.subr.bf16.mxu0 %v4921_v24  ;;  %598 = vmatprep.subr.bf16.mxu1 %v4923_v25  ;;  %v4989_v2 = vld [vmem:[#allocation8 + $0x2e4] ss:$16 sps:$4 sm:$0xff]   ;;  %v4987_v5 = vld [vmem:[#allocation8 + $0x2e0] ss:$16 sps:$4 sm:$0xff]  }
  0x70   :  { %v4981_v3 = vld [vmem:[#allocation2] ss:$8 sps:$4 sm:$0xff]   ;;  %v4990_v8 = vld [vmem:[#allocation8 + $0xc0] ss:$16 sps:$4 sm:$0xff]  }
  0x71   :  { %v4992_v6 = vld [vmem:[#allocation8 + $0xc4] ss:$16 sps:$4 sm:$0xff]   ;;  %v4993_v9 = vld [vmem:[#allocation8 + $0x2c0] ss:$16 sps:$4 sm:$0xff]  }
  0x72   :  { %556 = vmatpush1.bf16.msra.mxu0 %v4925_v26  ;;  %599 = vmatpush1.bf16.msra.mxu1 %v4926_v27  ;;  %v4995_v7 = vld [vmem:[#allocation8 + $0x2c4] ss:$16 sps:$4 sm:$0xff]   ;;  %v4996_v12 = vld [vmem:[#allocation8 + $0xa0] ss:$16 sps:$4 sm:$0xff]  }
  0x73   :  { %557 = vmatprep.subr.bf16.mxu0 %v4927_v28  ;;  %600 = vmatprep.subr.bf16.mxu1 %v4929_v29  ;;  %v4998_v10 = vld [vmem:[#allocation8 + $0xa4] ss:$16 sps:$4 sm:$0xff]   ;;  %v4999_v13 = vld [vmem:[#allocation8 + $0x2a0] ss:$16 sps:$4 sm:$0xff]  }
  0x74   :  { %v5001_v11 = vld [vmem:[#allocation8 + $0x2a4] ss:$16 sps:$4 sm:$0xff]   ;;  %v5002_v16 = vld [vmem:[#allocation8 + $0x80] ss:$16 sps:$4 sm:$0xff]  }
  0x75   :  { %v5004_v14 = vld [vmem:[#allocation8 + $0x84] ss:$16 sps:$4 sm:$0xff]   ;;  %v5005_v17 = vld [vmem:[#allocation8 + $0x280] ss:$16 sps:$4 sm:$0xff]  }
  0x76   :  { %558 = vmatpush1.bf16.msra.mxu0 %v4931_v30  ;;  %601 = vmatpush1.bf16.msra.mxu1 %v4932_v31  ;;  %v5007_v15 = vld [vmem:[#allocation8 + $0x284] ss:$16 sps:$4 sm:$0xff]   ;;  %v5008_v20 = vld [vmem:[#allocation8 + $0x60] ss:$16 sps:$4 sm:$0xff]  }
  0x77   :  { %559 = vmatprep.subr.bf16.mxu0 %v4933_v32  ;;  %602 = vmatprep.subr.bf16.mxu1 %v4935_v33  ;;  %v5010_v18 = vld [vmem:[#allocation8 + $0x64] ss:$16 sps:$4 sm:$0xff]   ;;  %v5011_v21 = vld [vmem:[#allocation8 + $0x260] ss:$16 sps:$4 sm:$0xff]  }
  0x78   :  { %v5013_v19 = vld [vmem:[#allocation8 + $0x264] ss:$16 sps:$4 sm:$0xff]   ;;  %v5014_v24 = vld [vmem:[#allocation8 + $0x40] ss:$16 sps:$4 sm:$0xff]  }
  0x79   :  { %v5016_v22 = vld [vmem:[#allocation8 + $0x44] ss:$16 sps:$4 sm:$0xff]   ;;  %v5017_v25 = vld [vmem:[#allocation8 + $0x240] ss:$16 sps:$4 sm:$0xff]  }
  0x7a   :  { %560 = vmatpush2.bf16.msra.mxu0 %v4937_v34  ;;  %603 = vmatpush2.bf16.msra.mxu1 %v4938_v35  ;;  %v5019_v23 = vld [vmem:[#allocation8 + $0x244] ss:$16 sps:$4 sm:$0xff]   ;;  %v5020_v28 = vld [vmem:[#allocation8 + $0x20] ss:$16 sps:$4 sm:$0xff]  }
  0x7b   :  { %561 = vmatprep.subr.bf16.mxu0 %v4939_v36  ;;  %604 = vmatprep.subr.bf16.mxu1 %v4941_v37  ;;  %v5022_v26 = vld [vmem:[#allocation8 + $0x24] ss:$16 sps:$4 sm:$0xff]   ;;  %v5023_v29 = vld [vmem:[#allocation8 + $0x220] ss:$16 sps:$4 sm:$0xff]  }
  0x7c   :  { %v5025_v27 = vld [vmem:[#allocation8 + $0x224] ss:$16 sps:$4 sm:$0xff]   ;;  %v5026_v32 = vld [vmem:[#allocation8] ss:$16 sps:$4 sm:$0xff]  }
  0x7d   :  { %v5028_v30 = vld [vmem:[#allocation8 + $0x4] ss:$16 sps:$4 sm:$0xff]   ;;  %v5029_v33 = vld [vmem:[#allocation8 + $0x200] ss:$16 sps:$4 sm:$0xff]  }
  0x7e   :  { %562 = vmatpush2.bf16.msra.mxu0 %v4943_v38  ;;  %605 = vmatpush2.bf16.msra.mxu1 %v4944_v39  ;;  %v5031_v31 = vld [vmem:[#allocation8 + $0x204] ss:$16 sps:$4 sm:$0xff]   ;;  %v5032_v36 = vld [vmem:[#allocation8 + $0x1e0] ss:$16 sps:$4 sm:$0xff]  }
  0x7f   :  { %563 = vmatprep.subr.bf16.mxu0 %v4945_v40  ;;  %606 = vmatprep.subr.bf16.mxu1 %v4947_v41  ;;  %v5034_v34 = vld [vmem:[#allocation8 + $0x1e4] ss:$16 sps:$4 sm:$0xff]   ;;  %v5035_v37 = vld [vmem:[#allocation8 + $0x3e0] ss:$16 sps:$4 sm:$0xff]  }
  0x80   :  { %v5037_v35 = vld [vmem:[#allocation8 + $0x3e4] ss:$16 sps:$4 sm:$0xff]   ;;  %v5038_v40 = vld [vmem:[#allocation8 + $0x1c0] ss:$16 sps:$4 sm:$0xff]  }
  0x81   :  { %v5040_v38 = vld [vmem:[#allocation8 + $0x1c4] ss:$16 sps:$4 sm:$0xff]   ;;  %v5041_v41 = vld [vmem:[#allocation8 + $0x3c0] ss:$16 sps:$4 sm:$0xff]  }
  0x82   :  { %564 = vmatpush2.bf16.msra.mxu0 %v4949_v42  ;;  %607 = vmatpush2.bf16.msra.mxu1 %v4950_v43  ;;  %v5043_v39 = vld [vmem:[#allocation8 + $0x3c4] ss:$16 sps:$4 sm:$0xff]   ;;  %v5050_v48 = vld [vmem:[#allocation8 + $0x180] ss:$16 sps:$4 sm:$0xff]  }
  0x83   :  { %565 = vmatprep.subr.bf16.mxu0 %v4951_v44  ;;  %608 = vmatprep.subr.bf16.mxu1 %v4953_v45  ;;  %v5046_v42 = vld [vmem:[#allocation8 + $0x1a4] ss:$16 sps:$4 sm:$0xff]   ;;  %v5044_v44 = vld [vmem:[#allocation8 + $0x1a0] ss:$16 sps:$4 sm:$0xff]  }
  0x84   :  { %v5049_v43 = vld [vmem:[#allocation8 + $0x3a4] ss:$16 sps:$4 sm:$0xff]   ;;  %v5047_v45 = vld [vmem:[#allocation8 + $0x3a0] ss:$16 sps:$4 sm:$0xff]  }
  0x86   :  { %566 = vmatpush2.bf16.msra.mxu0 %v4955_v46  ;;  %609 = vmatpush2.bf16.msra.mxu1 %v4956_v47  ;;  %v5052_v46 = vld [vmem:[#allocation8 + $0x184] ss:$16 sps:$4 sm:$0xff]  }
  0x87   :  { %567 = vmatprep.subr.bf16.mxu0 %v4957_v49  ;;  %610 = vmatprep.subr.bf16.mxu1 %v4959_v50  ;;  %v5055_v47 = vld [vmem:[#allocation8 + $0x384] ss:$16 sps:$4 sm:$0xff]   ;;  %v5053_v49 = vld [vmem:[#allocation8 + $0x380] ss:$16 sps:$4 sm:$0xff]  }
  0x88   :  { %v5058_v50 = vld [vmem:[#allocation8 + $0x164] ss:$16 sps:$4 sm:$0xff]  }
  0x8a   :  { %568 = vmatpush2.bf16.msra.mxu0 %v4961_v51  ;;  %611 = vmatpush2.bf16.msra.mxu1 %v4962_v52  ;;  %v5061_v51 = vld [vmem:[#allocation8 + $0x364] ss:$16 sps:$4 sm:$0xff]   ;;  %v5056_v52 = vld [vmem:[#allocation8 + $0x160] ss:$16 sps:$4 sm:$0xff]  }
  0x8b   :  { %569 = vmatprep.subr.bf16.mxu0 %v4963_v53  ;;  %612 = vmatprep.subr.bf16.mxu1 %v4965_v54  ;;  %v5059_v53 = vld [vmem:[#allocation8 + $0x360] ss:$16 sps:$4 sm:$0xff]   ;;  %v5064_v54 = vld [vmem:[#allocation8 + $0x144] ss:$16 sps:$4 sm:$0xff]  }
  0x8e   :  { %570 = vmatpush2.bf16.msra.mxu0 %v4967_v55  ;;  %613 = vmatpush2.bf16.msra.mxu1 %v4968_v56  ;;  %v5067_v55 = vld [vmem:[#allocation8 + $0x344] ss:$16 sps:$4 sm:$0xff]   ;;  %v5062_v56 = vld [vmem:[#allocation8 + $0x140] ss:$16 sps:$4 sm:$0xff]  }
  0x8f   :  { %571 = vmatprep.subr.bf16.mxu0 %v4969_v57  ;;  %614 = vmatprep.subr.bf16.mxu1 %v4971_v58  ;;  %v5065_v57 = vld [vmem:[#allocation8 + $0x340] ss:$16 sps:$4 sm:$0xff]   ;;  %v5070_v58 = vld [vmem:[#allocation8 + $0x124] ss:$16 sps:$4 sm:$0xff]  }
  0x92   :  { %572 = vmatpush2.bf16.msra.mxu0 %v4973_v59  ;;  %615 = vmatpush2.bf16.msra.mxu1 %v4974_v60  ;;  %v5073_v59 = vld [vmem:[#allocation8 + $0x324] ss:$16 sps:$4 sm:$0xff]   ;;  %v5068_v60 = vld [vmem:[#allocation8 + $0x120] ss:$16 sps:$4 sm:$0xff]  }
  0x93   :  { %573 = vmatprep.subr.bf16.mxu0 %v4975_v61  ;;  %616 = vmatprep.subr.bf16.mxu1 %v4977_v62  ;;  %v5071_v61 = vld [vmem:[#allocation8 + $0x320] ss:$16 sps:$4 sm:$0xff]   ;;  %v5076_v62 = vld [vmem:[#allocation8 + $0x104] ss:$16 sps:$4 sm:$0xff]  }
  0x96   :  { %574 = vmatpush2.bf16.msra.mxu0 %v4979_v63  ;;  %617 = vmatpush2.bf16.msra.mxu1 %v4980_v0  ;;  %v5079_v63 = vld [vmem:[#allocation8 + $0x304] ss:$16 sps:$4 sm:$0xff]   ;;  %v5074_v0 = vld [vmem:[#allocation8 + $0x100] ss:$16 sps:$4 sm:$0xff]  }
  0x97   :  { %1431 = vmatprep.subr.bf16.mxu0 %v4986_v1  ;;  %1474 = vmatprep.subr.bf16.mxu1 %v4989_v2  ;;  %v5077_v1 = vld [vmem:[#allocation8 + $0x300] ss:$16 sps:$4 sm:$0xff]   ;;  %v5082_v2 = vld [vmem:[#allocation8 + $0xec] ss:$16 sps:$4 sm:$0xff]  }
  0x99   :  { %576 = vmatmul.mubr.bf16.vlgmr.msra.gmra.mxu0 %v4981_v3  ;;  %619 = vmatmul.mubr.bf16.vlgmr.msra.gmra.mxu1 %v4981_v3  ;;  %v5085_v3 = vld [vmem:[#allocation8 + $0x2ec] ss:$16 sps:$4 sm:$0xff]  }
  0x9a   :  { %1432 = vmatpush1.bf16.msra.mxu0 %v4984_v4  ;;  %1475 = vmatpush1.bf16.msra.mxu1 %v4987_v5  ;;  %v193_v4 = vlaneseq }
  0x9b   :  { %1433 = vmatprep.subr.bf16.mxu0 %v4992_v6  ;;  %1476 = vmatprep.subr.bf16.mxu1 %v4995_v7 }
  0x9c   :  { %v5500_v5 = vshrl.u32 %v193_v4, 7  ;;  %v5119_v4 = vld [vmem:[#allocation8 + $0x228] ss:$16 sps:$4 sm:$0xff]  }
  0x9e   :  { %1434 = vmatpush1.bf16.msra.mxu0 %v4990_v8  ;;  %1477 = vmatpush1.bf16.msra.mxu1 %v4993_v9  ;;  %v5503_v6 = vsub.s32 1, %v5500_v5  ;;  %v5506_v7 = vsub.s32 3, %v5500_v5  ;;  %v5509_v8 = vsub.s32 0, %v5500_v5  ;;  %v5512_v9 = vsub.s32 2, %v5500_v5 }
  0x9f   :  { %1435 = vmatprep.subr.bf16.mxu0 %v4998_v10  ;;  %1478 = vmatprep.subr.bf16.mxu1 %v5001_v11  ;;  %v191_v10 = vld [vmem:[#allocation7] sm:$0xf] }
  0xa2   :  { %1436 = vmatpush1.bf16.msra.mxu0 %v4996_v12  ;;  %1479 = vmatpush1.bf16.msra.mxu1 %v4999_v13  ;;  %v200_v13 = vrot.slane %v191_v10, %v5503_v6 }
  0xa3   :  { %1437 = vmatprep.subr.bf16.mxu0 %v5004_v14  ;;  %1480 = vmatprep.subr.bf16.mxu1 %v5007_v15  ;;  %v208_v14 = vrot.slane %v191_v10, %v5506_v7  ;;  %v196_v15 = vrot.slane %v191_v10, %v5509_v8 }
  0xa6   :  { %1438 = vmatpush1.bf16.msra.mxu0 %v5002_v16  ;;  %1481 = vmatpush1.bf16.msra.mxu1 %v5005_v17  ;;  %v204_v16 = vrot.slane %v191_v10, %v5512_v9  ;;  %v5124_v10 = vld [vmem:[#allocation8 + $0xc] ss:$16 sps:$4 sm:$0xff]  }
  0xa7   :  { %1439 = vmatprep.subr.bf16.mxu0 %v5010_v18  ;;  %1482 = vmatprep.subr.bf16.mxu1 %v5013_v19 }
  0xaa   :  { %1440 = vmatpush1.bf16.msra.mxu0 %v5008_v20  ;;  %1483 = vmatpush1.bf16.msra.mxu1 %v5011_v21 }
  0xab   :  { %1441 = vmatprep.subr.bf16.mxu0 %v5016_v22  ;;  %1484 = vmatprep.subr.bf16.mxu1 %v5019_v23 }
  0xae   :  { %1442 = vmatpush1.bf16.msra.mxu0 %v5014_v24  ;;  %1485 = vmatpush1.bf16.msra.mxu1 %v5017_v25 }
  0xaf   :  { %1443 = vmatprep.subr.bf16.mxu0 %v5022_v26  ;;  %1486 = vmatprep.subr.bf16.mxu1 %v5025_v27 }
  0xb2   :  { %1444 = vmatpush1.bf16.msra.mxu0 %v5020_v28  ;;  %1487 = vmatpush1.bf16.msra.mxu1 %v5023_v29 }
  0xb3   :  { %1445 = vmatprep.subr.bf16.mxu0 %v5028_v30  ;;  %1488 = vmatprep.subr.bf16.mxu1 %v5031_v31 }
  0xb6   :  { %1446 = vmatpush1.bf16.msra.mxu0 %v5026_v32  ;;  %1489 = vmatpush1.bf16.msra.mxu1 %v5029_v33 }
  0xb7   :  { %1447 = vmatprep.subr.bf16.mxu0 %v5034_v34  ;;  %1490 = vmatprep.subr.bf16.mxu1 %v5037_v35 }
  0xba   :  { %1448 = vmatpush2.bf16.msra.mxu0 %v5032_v36  ;;  %1491 = vmatpush2.bf16.msra.mxu1 %v5035_v37 }
  0xbb   :  { %1449 = vmatprep.subr.bf16.mxu0 %v5040_v38  ;;  %1492 = vmatprep.subr.bf16.mxu1 %v5043_v39 }
  0xbe   :  { %1450 = vmatpush2.bf16.msra.mxu0 %v5038_v40  ;;  %1493 = vmatpush2.bf16.msra.mxu1 %v5041_v41  ;;  %v5080_v41 = vld [vmem:[#allocation8 + $0xe8] ss:$16 sps:$4 sm:$0xff]  }
  0xbf   :  { %1451 = vmatprep.subr.bf16.mxu0 %v5046_v42  ;;  %1494 = vmatprep.subr.bf16.mxu1 %v5049_v43  ;;  %v5083_v42 = vld [vmem:[#allocation8 + $0x2e8] ss:$16 sps:$4 sm:$0xff]  }
  0xc2   :  { %1452 = vmatpush2.bf16.msra.mxu0 %v5044_v44  ;;  %1495 = vmatpush2.bf16.msra.mxu1 %v5047_v45  ;;  %v5088_v45 = vld [vmem:[#allocation8 + $0xcc] ss:$16 sps:$4 sm:$0xff]  }
  0xc3   :  { %1453 = vmatprep.subr.bf16.mxu0 %v5052_v46  ;;  %1496 = vmatprep.subr.bf16.mxu1 %v5055_v47  ;;  %v5091_v46 = vld [vmem:[#allocation8 + $0x2cc] ss:$16 sps:$4 sm:$0xff]   ;;  %v5086_v47 = vld [vmem:[#allocation8 + $0xc8] ss:$16 sps:$4 sm:$0xff]  }
  0xc6   :  { %1454 = vmatpush2.bf16.msra.mxu0 %v5050_v48  ;;  %1497 = vmatpush2.bf16.msra.mxu1 %v5053_v49  ;;  %v5089_v48 = vld [vmem:[#allocation8 + $0x2c8] ss:$16 sps:$4 sm:$0xff]   ;;  %v5094_v49 = vld [vmem:[#allocation8 + $0xac] ss:$16 sps:$4 sm:$0xff]  }
  0xc7   :  { %1455 = vmatprep.subr.bf16.mxu0 %v5058_v50  ;;  %1498 = vmatprep.subr.bf16.mxu1 %v5061_v51  ;;  %v5097_v50 = vld [vmem:[#allocation8 + $0x2ac] ss:$16 sps:$4 sm:$0xff]   ;;  %v5092_v51 = vld [vmem:[#allocation8 + $0xa8] ss:$16 sps:$4 sm:$0xff]  }
  0xca   :  { %1456 = vmatpush2.bf16.msra.mxu0 %v5056_v52  ;;  %1499 = vmatpush2.bf16.msra.mxu1 %v5059_v53  ;;  %v5095_v52 = vld [vmem:[#allocation8 + $0x2a8] ss:$16 sps:$4 sm:$0xff]   ;;  %v5100_v53 = vld [vmem:[#allocation8 + $0x8c] ss:$16 sps:$4 sm:$0xff]  }
  0xcb   :  { %1457 = vmatprep.subr.bf16.mxu0 %v5064_v54  ;;  %1500 = vmatprep.subr.bf16.mxu1 %v5067_v55  ;;  %v5103_v54 = vld [vmem:[#allocation8 + $0x28c] ss:$16 sps:$4 sm:$0xff]   ;;  %v5098_v55 = vld [vmem:[#allocation8 + $0x88] ss:$16 sps:$4 sm:$0xff]  }
  0xce   :  { %1458 = vmatpush2.bf16.msra.mxu0 %v5062_v56  ;;  %1501 = vmatpush2.bf16.msra.mxu1 %v5065_v57  ;;  %v5101_v56 = vld [vmem:[#allocation8 + $0x288] ss:$16 sps:$4 sm:$0xff]   ;;  %v5106_v57 = vld [vmem:[#allocation8 + $0x6c] ss:$16 sps:$4 sm:$0xff]  }
  0xcf   :  { %1459 = vmatprep.subr.bf16.mxu0 %v5070_v58  ;;  %1502 = vmatprep.subr.bf16.mxu1 %v5073_v59  ;;  %v5109_v58 = vld [vmem:[#allocation8 + $0x26c] ss:$16 sps:$4 sm:$0xff]   ;;  %v5104_v59 = vld [vmem:[#allocation8 + $0x68] ss:$16 sps:$4 sm:$0xff]  }
  0xd2   :  { %1460 = vmatpush2.bf16.msra.mxu0 %v5068_v60  ;;  %1503 = vmatpush2.bf16.msra.mxu1 %v5071_v61  ;;  %v5107_v60 = vld [vmem:[#allocation8 + $0x268] ss:$16 sps:$4 sm:$0xff]   ;;  %v5112_v61 = vld [vmem:[#allocation8 + $0x4c] ss:$16 sps:$4 sm:$0xff]  }
  0xd3   :  { %1461 = vmatprep.subr.bf16.mxu0 %v5076_v62  ;;  %1504 = vmatprep.subr.bf16.mxu1 %v5079_v63  ;;  %v5115_v62 = vld [vmem:[#allocation8 + $0x24c] ss:$16 sps:$4 sm:$0xff]   ;;  %v5110_v63 = vld [vmem:[#allocation8 + $0x48] ss:$16 sps:$4 sm:$0xff]  }
  0xd6   :  { %1462 = vmatpush2.bf16.msra.mxu0 %v5074_v0  ;;  %1505 = vmatpush2.bf16.msra.mxu1 %v5077_v1  ;;  %v5113_v0 = vld [vmem:[#allocation8 + $0x248] ss:$16 sps:$4 sm:$0xff]   ;;  %v5118_v1 = vld [vmem:[#allocation8 + $0x2c] ss:$16 sps:$4 sm:$0xff]  }
  0xd7   :  { %1517 = vmatprep.subr.bf16.mxu0 %v5082_v2  ;;  %1560 = vmatprep.subr.bf16.mxu1 %v5085_v3  ;;  %v5121_v2 = vld [vmem:[#allocation8 + $0x22c] ss:$16 sps:$4 sm:$0xff]   ;;  %v5116_v3 = vld [vmem:[#allocation8 + $0x28] ss:$16 sps:$4 sm:$0xff]  }
 0x159   :  { %v577_v11 = vpop.f32.mrf.mxu0  ;;  %v620_v12 = vpop.f32.mrf.mxu1 }
 0x15a   :  { %v578_v25 = vadd.f32 %v577_v11, %v196_v15  ;;  %v621_v26 = vadd.f32 %v620_v12, %v204_v16  ;;  %v5127_v11 = vld [vmem:[#allocation8 + $0x20c] ss:$16 sps:$4 sm:$0xff]   ;;  %v5122_v12 = vld [vmem:[#allocation8 + $0x8] ss:$16 sps:$4 sm:$0xff]  }
 0x15b   :  { %v579_v17 = vpop.f32.mrf.mxu0  ;;  %v622_v18 = vpop.f32.mrf.mxu1 }
 0x15c   :  { %v580_v21 = vadd.f32 %v579_v17, %v200_v13  ;;  %v623_v22 = vadd.f32 %v622_v18, %v208_v14  ;;  %v629_v37 = vmax.f32 %v578_v25, 0.0  ;;  %v631_v38 = vmax.f32 %v621_v26, 0.0  ;;  %v5131_v17 = vld [vmem:[#allocation8 + $0x3e8] ss:$16 sps:$4 sm:$0xff]   ;;  %v5136_v18 = vld [vmem:[#allocation8 + $0x1cc] ss:$16 sps:$4 sm:$0xff]  }
 0x15d   :  { %v581_v19 = vpop.f32.mrf.mxu0  ;;  %v624_v20 = vpop.f32.mrf.mxu1  ;;  %v5143_v25 = vld [vmem:[#allocation8 + $0x3a8] ss:$16 sps:$4 sm:$0xff]   ;;  %v5148_v26 = vld [vmem:[#allocation8 + $0x18c] ss:$16 sps:$4 sm:$0xff]  }
 0x15e   :  { %v582_v23 = vadd.f32 %v581_v19, %v196_v15  ;;  %v625_v24 = vadd.f32 %v624_v20, %v204_v16  ;;  %v630_v33 = vmax.f32 %v580_v21, 0.0  ;;  %v632_v34 = vmax.f32 %v623_v22, 0.0  ;;  %v5133_v15 = vld [vmem:[#allocation8 + $0x3ec] ss:$16 sps:$4 sm:$0xff]   ;;  %v5128_v16 = vld [vmem:[#allocation8 + $0x1e8] ss:$16 sps:$4 sm:$0xff]  }
 0x15f   :  { %v583_v27 = vpop.f32.mrf.mxu0  ;;  %v626_v28 = vpop.f32.mrf.mxu1  ;;  %v5139_v19 = vld [vmem:[#allocation8 + $0x3cc] ss:$16 sps:$4 sm:$0xff]   ;;  %v5134_v20 = vld [vmem:[#allocation8 + $0x1c8] ss:$16 sps:$4 sm:$0xff]  }
 0x160   :  { %v584_v29 = vadd.f32 %v583_v27, %v200_v13  ;;  %v627_v30 = vadd.f32 %v626_v28, %v208_v14  ;;  %v633_v31 = vmax.f32 %v582_v23, 0.0  ;;  %v635_v32 = vmax.f32 %v625_v24, 0.0  ;;  %v5125_v13 = vld [vmem:[#allocation8 + $0x208] ss:$16 sps:$4 sm:$0xff]   ;;  %v5130_v14 = vld [vmem:[#allocation8 + $0x1ec] ss:$16 sps:$4 sm:$0xff]  }
 0x161   :  { %v5137_v21 = vld [vmem:[#allocation8 + $0x3c8] ss:$16 sps:$4 sm:$0xff]   ;;  %v5142_v22 = vld [vmem:[#allocation8 + $0x1ac] ss:$16 sps:$4 sm:$0xff]  }
 0x162   :  { %v634_v35 = vmax.f32 %v584_v29, 0.0  ;;  %v636_v36 = vmax.f32 %v627_v30, 0.0  ;;  %v5518_v43 = vpack.c.bf16 %v633_v31, %v629_v37  ;;  %v5520_v44 = vpack.c.bf16 %v635_v32, %v631_v38  ;;  %v5145_v23 = vld [vmem:[#allocation8 + $0x3ac] ss:$16 sps:$4 sm:$0xff]   ;;  %v5140_v24 = vld [vmem:[#allocation8 + $0x1a8] ss:$16 sps:$4 sm:$0xff]  }
 0x163   :  { %v5151_v27 = vld [vmem:[#allocation8 + $0x38c] ss:$16 sps:$4 sm:$0xff]   ;;  %v5146_v28 = vld [vmem:[#allocation8 + $0x188] ss:$16 sps:$4 sm:$0xff]  }
 0x164   :  { %v638_v39 = vpack.c.bf16 %v634_v35, %v630_v33  ;;  %v640_v40 = vpack.c.bf16 %v636_v36, %v632_v34  ;;  %v5149_v29 = vld [vmem:[#allocation8 + $0x388] ss:$16 sps:$4 sm:$0xff]   ;;  %v5154_v30 = vld [vmem:[#allocation8 + $0x16c] ss:$16 sps:$4 sm:$0xff]  }
 0x165   :  { %v5157_v31 = vld [vmem:[#allocation8 + $0x36c] ss:$16 sps:$4 sm:$0xff]   ;;  %v5152_v32 = vld [vmem:[#allocation8 + $0x168] ss:$16 sps:$4 sm:$0xff]  }
 0x166   :  { %1463 = vmatprep.mubr.bf16.mxu0 %v638_v39  ;;  %1506 = vmatprep.mubr.bf16.mxu1 %v640_v40  ;;  %v5155_v33 = vld [vmem:[#allocation8 + $0x368] ss:$16 sps:$4 sm:$0xff]   ;;  %v5160_v34 = vld [vmem:[#allocation8 + $0x14c] ss:$16 sps:$4 sm:$0xff]  }
 0x167   :  { %1464 = vmatmul.mubr.bf16.vlgmr.msra.gmra.mxu0 %v5518_v43  ;;  %1507 = vmatmul.mubr.bf16.vlgmr.msra.gmra.mxu1 %v5520_v44  ;;  %v5163_v35 = vld [vmem:[#allocation8 + $0x34c] ss:$16 sps:$4 sm:$0xff]   ;;  %v5158_v36 = vld [vmem:[#allocation8 + $0x148] ss:$16 sps:$4 sm:$0xff]  }
 0x168   :  { %1518 = vmatpush1.bf16.msra.mxu0 %v5080_v41  ;;  %1561 = vmatpush1.bf16.msra.mxu1 %v5083_v42  ;;  %v5161_v37 = vld [vmem:[#allocation8 + $0x348] ss:$16 sps:$4 sm:$0xff]   ;;  %v5166_v38 = vld [vmem:[#allocation8 + $0x12c] ss:$16 sps:$4 sm:$0xff]  }
 0x169   :  { %1549 = vmatprep.mubr.bf16.mxu0 %v638_v39  ;;  %1592 = vmatprep.mubr.bf16.mxu1 %v640_v40  ;;  %v5169_v39 = vld [vmem:[#allocation8 + $0x32c] ss:$16 sps:$4 sm:$0xff]   ;;  %v5164_v40 = vld [vmem:[#allocation8 + $0x128] ss:$16 sps:$4 sm:$0xff]  }
 0x16a   :  { %1519 = vmatprep.subr.bf16.mxu0 %v5088_v45  ;;  %1562 = vmatprep.subr.bf16.mxu1 %v5091_v46  ;;  %v5167_v41 = vld [vmem:[#allocation8 + $0x328] ss:$16 sps:$4 sm:$0xff]   ;;  %v5172_v42 = vld [vmem:[#allocation8 + $0x10c] ss:$16 sps:$4 sm:$0xff]  }
 0x16b   :  { %v5175_v45 = vld [vmem:[#allocation8 + $0x30c] ss:$16 sps:$4 sm:$0xff]   ;;  %v1671_v46 = vld [vmem:[#allocation11 + $0x1c0] sm:$0xff] }
 0x16c   :  { %1520 = vmatpush1.bf16.msra.mxu0 %v5086_v47  ;;  %1563 = vmatpush1.bf16.msra.mxu1 %v5089_v48  ;;  %v1675_v47 = vld [vmem:[#allocation11 + $0x1e0] sm:$0xff] }
 0x16d   :  { %1521 = vmatprep.subr.bf16.mxu0 %v5094_v49  ;;  %1564 = vmatprep.subr.bf16.mxu1 %v5097_v50  ;;  %v5170_v48 = vld [vmem:[#allocation8 + $0x108] ss:$16 sps:$4 sm:$0xff]   ;;  %v4517_v50 = vcombine.high %v1671_v46, %v1675_v47 }
 0x16e   :  { %v5173_v49 = vld [vmem:[#allocation8 + $0x308] ss:$16 sps:$4 sm:$0xff]  }
 0x170   :  { %1522 = vmatpush1.bf16.msra.mxu0 %v5092_v51  ;;  %1565 = vmatpush1.bf16.msra.mxu1 %v5095_v52  ;;  %v1663_v51 = vld [vmem:[#allocation11 + $0x180] sm:$0xff] }
 0x171   :  { %1523 = vmatprep.subr.bf16.mxu0 %v5100_v53  ;;  %1566 = vmatprep.subr.bf16.mxu1 %v5103_v54  ;;  %v1667_v52 = vld [vmem:[#allocation11 + $0x1a0] sm:$0xff]  ;;  %v4516_v53 = vcombine.low %v1671_v46, %v1675_v47 }
 0x172   :  { %v4509_v54 = vcombine.high %v1663_v51, %v1667_v52  ;;  %v1771_v46 = vld [vmem:[#allocation11 + $0x4e0] sm:$0xff] }
 0x174   :  { %1524 = vmatpush1.bf16.msra.mxu0 %v5098_v55  ;;  %1567 = vmatpush1.bf16.msra.mxu1 %v5101_v56  ;;  %v1655_v55 = vld [vmem:[#allocation11 + $0x140] sm:$0xff] }
 0x175   :  { %1525 = vmatprep.subr.bf16.mxu0 %v5106_v57  ;;  %1568 = vmatprep.subr.bf16.mxu1 %v5109_v58  ;;  %v1659_v56 = vld [vmem:[#allocation11 + $0x160] sm:$0xff]  ;;  %v4508_v57 = vcombine.low %v1663_v51, %v1667_v52 }
 0x176   :  { %v4501_v58 = vcombine.high %v1655_v55, %v1659_v56  ;;  %v1719_v51 = vld [vmem:[#allocation11 + $0x340] sm:$0xff] }
 0x177   :  { %v1723_v52 = vld [vmem:[#allocation11 + $0x360] sm:$0xff] }
 0x178   :  { %1526 = vmatpush1.bf16.msra.mxu0 %v5104_v59  ;;  %1569 = vmatpush1.bf16.msra.mxu1 %v5107_v60  ;;  %v1647_v59 = vld [vmem:[#allocation11 + $0x100] sm:$0xff] }
 0x179   :  { %1527 = vmatprep.subr.bf16.mxu0 %v5112_v61  ;;  %1570 = vmatprep.subr.bf16.mxu1 %v5115_v62  ;;  %v1651_v60 = vld [vmem:[#allocation11 + $0x120] sm:$0xff]  ;;  %v4500_v61 = vcombine.low %v1655_v55, %v1659_v56 }
 0x17a   :  { %v4493_v62 = vcombine.high %v1647_v59, %v1651_v60 }
 0x17c   :  { %1528 = vmatpush1.bf16.msra.mxu0 %v5110_v63  ;;  %1571 = vmatpush1.bf16.msra.mxu1 %v5113_v0  ;;  %v1639_v63 = vld [vmem:[#allocation11 + $0xc0] sm:$0xff] }
 0x17d   :  { %1529 = vmatprep.subr.bf16.mxu0 %v5118_v1  ;;  %1572 = vmatprep.subr.bf16.mxu1 %v5121_v2  ;;  %v1643_v0 = vld [vmem:[#allocation11 + $0xe0] sm:$0xff]  ;;  %v4492_v1 = vcombine.low %v1647_v59, %v1651_v60 }
 0x17e   :  { %v4485_v2 = vcombine.high %v1639_v63, %v1643_v0  ;;  %v1711_v59 = vld [vmem:[#allocation11 + $0x300] sm:$0xff] }
 0x17f   :  { %v1715_v60 = vld [vmem:[#allocation11 + $0x320] sm:$0xff] }
 0x180   :  { %1530 = vmatpush1.bf16.msra.mxu0 %v5116_v3  ;;  %1573 = vmatpush1.bf16.msra.mxu1 %v5119_v4  ;;  %v1631_v3 = vld [vmem:[#allocation11 + $0x80] sm:$0xff] }
 0x181   :  { %1531 = vmatprep.subr.bf16.mxu0 %v5124_v10  ;;  %1574 = vmatprep.subr.bf16.mxu1 %v5127_v11  ;;  %v1799_v4 = vld [vmem:[#allocation11 + $0x5c0] sm:$0xff]  ;;  %v4484_v10 = vcombine.low %v1639_v63, %v1643_v0  ;;  %v4564_v63 = vcombine.low %v1719_v51, %v1723_v52 }
 0x184   :  { %1532 = vmatpush1.bf16.msra.mxu0 %v5122_v12  ;;  %1575 = vmatpush1.bf16.msra.mxu1 %v5125_v13  ;;  %v5526_v13 = vld [vmem:[#allocation11 + $0x1c8] sm:$0xff] }
 0x185   :  { %1533 = vmatprep.subr.bf16.mxu0 %v5130_v14  ;;  %1576 = vmatprep.subr.bf16.mxu1 %v5133_v15  ;;  %v5528_v14 = vld [vmem:[#allocation11 + $0x1e8] sm:$0xff] }
 0x188   :  { %1534 = vmatpush2.bf16.msra.mxu0 %v5128_v16  ;;  %1577 = vmatpush2.bf16.msra.mxu1 %v5131_v17  ;;  %v1623_v16 = vld [vmem:[#allocation11 + $0x40] sm:$0xff] }
 0x189   :  { %1535 = vmatprep.subr.bf16.mxu0 %v5136_v18  ;;  %1578 = vmatprep.subr.bf16.mxu1 %v5139_v19  ;;  %v1627_v17 = vld [vmem:[#allocation11 + $0x60] sm:$0xff]  ;;  %v4518_v18 = vcombine.low %v5526_v13, %v5528_v14 }
 0x18a   :  { %v1791_v19 = vld [vmem:[#allocation11 + $0x580] sm:$0xff] }
 0x18c   :  { %1536 = vmatpush2.bf16.msra.mxu0 %v5134_v20  ;;  %1579 = vmatpush2.bf16.msra.mxu1 %v5137_v21  ;;  %v1795_v20 = vld [vmem:[#allocation11 + $0x5a0] sm:$0xff] }
 0x18d   :  { %1537 = vmatprep.subr.bf16.mxu0 %v5142_v22  ;;  %1580 = vmatprep.subr.bf16.mxu1 %v5145_v23  ;;  %v4636_v22 = vcombine.low %v1791_v19, %v1795_v20  ;;  %v4637_v23 = vcombine.high %v1791_v19, %v1795_v20  ;;  %v1863_v19 = vld [vmem:[#allocation11 + $0x7c0] sm:$0xff] }
 0x18e   :  { %v1867_v20 = vld [vmem:[#allocation11 + $0x7e0] sm:$0xff] }
 0x190   :  { %1538 = vmatpush2.bf16.msra.mxu0 %v5140_v24  ;;  %1581 = vmatpush2.bf16.msra.mxu1 %v5143_v25  ;;  %v4469_v24 = vcombine.high %v1623_v16, %v1627_v17  ;;  %v1615_v25 = vld [vmem:[#allocation11] sm:$0xff] }
 0x191   :  { %1539 = vmatprep.subr.bf16.mxu0 %v5148_v26  ;;  %1582 = vmatprep.subr.bf16.mxu1 %v5151_v27  ;;  %v1619_v26 = vld [vmem:[#allocation11 + $0x20] sm:$0xff] }
 0x192   :  { %v1783_v27 = vld [vmem:[#allocation11 + $0x540] sm:$0xff] }
 0x194   :  { %1540 = vmatpush2.bf16.msra.mxu0 %v5146_v28  ;;  %1583 = vmatpush2.bf16.msra.mxu1 %v5149_v29  ;;  %v1787_v28 = vld [vmem:[#allocation11 + $0x560] sm:$0xff]  ;;  %v4468_v29 = vcombine.low %v1623_v16, %v1627_v17 }
 0x195   :  { %1541 = vmatprep.subr.bf16.mxu0 %v5154_v30  ;;  %1584 = vmatprep.subr.bf16.mxu1 %v5157_v31  ;;  %v4628_v30 = vcombine.low %v1783_v27, %v1787_v28  ;;  %v4629_v31 = vcombine.high %v1783_v27, %v1787_v28  ;;  %v1695_v16 = vld [vmem:[#allocation11 + $0x280] sm:$0xff] }
 0x196   :  { %v1699_v17 = vld [vmem:[#allocation11 + $0x2a0] sm:$0xff] }
 0x197   :  { %v1855_v27 = vld [vmem:[#allocation11 + $0x780] sm:$0xff] }
 0x198   :  { %1542 = vmatpush2.bf16.msra.mxu0 %v5152_v32  ;;  %1585 = vmatpush2.bf16.msra.mxu1 %v5155_v33  ;;  %v4461_v32 = vcombine.high %v1615_v25, %v1619_v26  ;;  %v1735_v33 = vld [vmem:[#allocation11 + $0x3c0] sm:$0xff] }
 0x199   :  { %1543 = vmatprep.subr.bf16.mxu0 %v5160_v34  ;;  %1586 = vmatprep.subr.bf16.mxu1 %v5163_v35  ;;  %v1739_v34 = vld [vmem:[#allocation11 + $0x3e0] sm:$0xff] }
 0x19a   :  { %v1775_v35 = vld [vmem:[#allocation11 + $0x500] sm:$0xff]  ;;  %v4580_v47 = vcombine.low %v1735_v33, %v1739_v34 }
 0x19b   :  { %v1859_v28 = vld [vmem:[#allocation11 + $0x7a0] sm:$0xff] }
 0x19c   :  { %1544 = vmatpush2.bf16.msra.mxu0 %v5158_v36  ;;  %1587 = vmatpush2.bf16.msra.mxu1 %v5161_v37  ;;  %v1779_v36 = vld [vmem:[#allocation11 + $0x520] sm:$0xff]  ;;  %v4460_v37 = vcombine.low %v1615_v25, %v1619_v26 }
 0x19d   :  { %1545 = vmatprep.subr.bf16.mxu0 %v5166_v38  ;;  %1588 = vmatprep.subr.bf16.mxu1 %v5169_v39  ;;  %v4620_v38 = vcombine.low %v1775_v35, %v1779_v36  ;;  %v4621_v39 = vcombine.high %v1775_v35, %v1779_v36  ;;  %v1687_v25 = vld [vmem:[#allocation11 + $0x240] sm:$0xff] }
 0x19e   :  { %v1691_v26 = vld [vmem:[#allocation11 + $0x260] sm:$0xff] }
 0x19f   :  { %v1847_v35 = vld [vmem:[#allocation11 + $0x740] sm:$0xff] }
 0x1a0   :  { %1546 = vmatpush2.bf16.msra.mxu0 %v5164_v40  ;;  %1589 = vmatpush2.bf16.msra.mxu1 %v5167_v41  ;;  %v4581_v40 = vcombine.high %v1735_v33, %v1739_v34  ;;  %v1727_v41 = vld [vmem:[#allocation11 + $0x380] sm:$0xff] }
 0x1a1   :  { %1547 = vmatprep.subr.bf16.mxu0 %v5172_v42  ;;  %1590 = vmatprep.subr.bf16.mxu1 %v5175_v45  ;;  %v1731_v42 = vld [vmem:[#allocation11 + $0x3a0] sm:$0xff] }
 0x1a2   :  { %v1767_v45 = vld [vmem:[#allocation11 + $0x4c0] sm:$0xff]  ;;  %v4572_v55 = vcombine.low %v1727_v41, %v1731_v42 }
 0x1a3   :  { %v1679_v33 = vld [vmem:[#allocation11 + $0x200] sm:$0xff] }
 0x1a4   :  { %1548 = vmatpush2.bf16.msra.mxu0 %v5170_v48  ;;  %1591 = vmatpush2.bf16.msra.mxu1 %v5173_v49  ;;  %v4612_v48 = vcombine.low %v1767_v45, %v1771_v46  ;;  %v4613_v49 = vcombine.high %v1767_v45, %v1771_v46  ;;  %v1683_v34 = vld [vmem:[#allocation11 + $0x220] sm:$0xff] }
 0x1a5   :  { %3193 = vmatprep.subr.bf16.mxu0 %v4517_v50  ;;  %v4573_v50 = vcombine.high %v1727_v41, %v1731_v42  ;;  %v1851_v36 = vld [vmem:[#allocation11 + $0x760] sm:$0xff]  ;;  %v4524_v45 = vcombine.low %v1679_v33, %v1683_v34 }
 0x1a6   :  { %v1839_v41 = vld [vmem:[#allocation11 + $0x700] sm:$0xff] }
 0x1a7   :  { %1550 = vmatmul.mubr.bf16.vlgmr.msra.gmra.mxu0 %v5518_v43  ;;  %1593 = vmatmul.mubr.bf16.vlgmr.msra.gmra.mxu1 %v5520_v44  ;;  %v1635_v43 = vld [vmem:[#allocation11 + $0xa0] sm:$0xff] }
 0x1a8   :  { %3194 = vmatpush1.bf16.msra.mxu0 %v4516_v53  ;;  %v1803_v44 = vld [vmem:[#allocation11 + $0x5e0] sm:$0xff]  ;;  %v4477_v15 = vcombine.high %v1631_v3, %v1635_v43  ;;  %v4476_v21 = vcombine.low %v1631_v3, %v1635_v43 }
 0x1a9   :  { %3195 = vmatprep.subr.bf16.mxu0 %v4509_v54  ;;  %v4644_v11 = vcombine.low %v1799_v4, %v1803_v44  ;;  %v4645_v12 = vcombine.high %v1799_v4, %v1803_v44  ;;  %v1759_v53 = vld [vmem:[#allocation11 + $0x480] sm:$0xff] }
 0x1aa   :  { %v1763_v54 = vld [vmem:[#allocation11 + $0x4a0] sm:$0xff] }
 0x1ab   :  { %3236 = vmatprep.subr.bf16.mxu1 %v4645_v12  ;;  %v4604_v56 = vcombine.low %v1759_v53, %v1763_v54  ;;  %v1703_v3 = vld [vmem:[#allocation11 + $0x2c0] sm:$0xff] }
 0x1ac   :  { %3196 = vmatpush1.bf16.msra.mxu0 %v4508_v57  ;;  %3237 = vmatpush1.bf16.msra.mxu1 %v4644_v11  ;;  %v4605_v57 = vcombine.high %v1759_v53, %v1763_v54  ;;  %v1707_v43 = vld [vmem:[#allocation11 + $0x2e0] sm:$0xff] }
 0x1ad   :  { %3197 = vmatprep.subr.bf16.mxu0 %v4501_v58  ;;  %3238 = vmatprep.subr.bf16.mxu1 %v4637_v23  ;;  %v4565_v58 = vcombine.high %v1719_v51, %v1723_v52  ;;  %v1743_v4 = vld [vmem:[#allocation11 + $0x400] sm:$0xff]  ;;  %v4709_v23 = vcombine.high %v1863_v19, %v1867_v20 }
 0x1ae   :  { %v1747_v44 = vld [vmem:[#allocation11 + $0x420] sm:$0xff] }
 0x1af   :  { %v4588_v11 = vcombine.low %v1743_v4, %v1747_v44  ;;  %v4589_v12 = vcombine.high %v1743_v4, %v1747_v44  ;;  %v1843_v42 = vld [vmem:[#allocation11 + $0x720] sm:$0xff]  ;;  %v5542_v4 = vld [vmem:[#allocation10] sm:$0xf] }
 0x1b0   :  { %3198 = vmatpush1.bf16.msra.mxu0 %v4500_v61  ;;  %3239 = vmatpush1.bf16.msra.mxu1 %v4636_v22  ;;  %v1751_v61 = vld [vmem:[#allocation11 + $0x440] sm:$0xff]  ;;  %v4708_v22 = vcombine.low %v1863_v19, %v1867_v20  ;;  %v4684_v46 = vcombine.low %v1839_v41, %v1843_v42  ;;  %v778_v44 = vrot.slane %v5542_v4, %v5503_v6 }
 0x1b1   :  { %3199 = vmatprep.subr.bf16.mxu0 %v4493_v62  ;;  %3240 = vmatprep.subr.bf16.mxu1 %v4629_v31  ;;  %v1755_v62 = vld [vmem:[#allocation11 + $0x460] sm:$0xff]  ;;  %v4701_v31 = vcombine.high %v1855_v27, %v1859_v28 }
 0x1b2   :  { %v4596_v0 = vcombine.low %v1751_v61, %v1755_v62  ;;  %v1823_v53 = vld [vmem:[#allocation11 + $0x680] sm:$0xff] }
 0x1b3   :  { %v1827_v54 = vld [vmem:[#allocation11 + $0x6a0] sm:$0xff] }
 0x1b4   :  { %3200 = vmatpush1.bf16.msra.mxu0 %v4492_v1  ;;  %3241 = vmatpush1.bf16.msra.mxu1 %v4628_v30  ;;  %v4597_v1 = vcombine.high %v1751_v61, %v1755_v62  ;;  %v4700_v30 = vcombine.low %v1855_v27, %v1859_v28  ;;  %v1807_v61 = vld [vmem:[#allocation11 + $0x600] sm:$0xff] }
 0x1b5   :  { %3201 = vmatprep.subr.bf16.mxu0 %v4485_v2  ;;  %3242 = vmatprep.subr.bf16.mxu1 %v4621_v39  ;;  %v4557_v2 = vcombine.high %v1711_v59, %v1715_v60  ;;  %v4693_v39 = vcombine.high %v1847_v35, %v1851_v36  ;;  %v1811_v62 = vld [vmem:[#allocation11 + $0x620] sm:$0xff] }
 0x1b8   :  { %3202 = vmatpush1.bf16.msra.mxu0 %v4484_v10  ;;  %3243 = vmatpush1.bf16.msra.mxu1 %v4620_v38  ;;  %v4556_v10 = vcombine.low %v1711_v59, %v1715_v60  ;;  %v4692_v38 = vcombine.low %v1847_v35, %v1851_v36 }
 0x1b9   :  { %3203 = vmatprep.subr.bf16.mxu0 %v4477_v15  ;;  %3244 = vmatprep.subr.bf16.mxu1 %v4613_v49  ;;  %v4549_v15 = vcombine.high %v1703_v3, %v1707_v43  ;;  %v1831_v49 = vld [vmem:[#allocation11 + $0x6c0] sm:$0xff] }
 0x1bc   :  { %3204 = vmatpush1.bf16.msra.mxu0 %v4476_v21  ;;  %3245 = vmatpush1.bf16.msra.mxu1 %v4612_v48  ;;  %v4548_v21 = vcombine.low %v1703_v3, %v1707_v43  ;;  %v4519_v48 = vcombine.high %v5526_v13, %v5528_v14  ;;  %v1636_v13 = vld [vmem:[#allocation11 + $0xa8] sm:$0xff] }
 0x1bd   :  { %3205 = vmatprep.subr.bf16.mxu0 %v4469_v24  ;;  %3246 = vmatprep.subr.bf16.mxu1 %v4605_v57  ;;  %v4541_v24 = vcombine.high %v1695_v16, %v1699_v17  ;;  %v1815_v57 = vld [vmem:[#allocation11 + $0x640] sm:$0xff] }
 0x1c0   :  { %3206 = vmatpush1.bf16.msra.mxu0 %v4468_v29  ;;  %3247 = vmatpush1.bf16.msra.mxu1 %v4604_v56  ;;  %v4540_v29 = vcombine.low %v1695_v16, %v1699_v17  ;;  %v4668_v56 = vcombine.low %v1823_v53, %v1827_v54 }
 0x1c1   :  { %3207 = vmatprep.subr.bf16.mxu0 %v4461_v32  ;;  %3248 = vmatprep.subr.bf16.mxu1 %v4597_v1  ;;  %v4533_v32 = vcombine.high %v1687_v25, %v1691_v26  ;;  %v5534_v1 = vld [vmem:[#allocation11 + $0x5c8] sm:$0xff] }
 0x1c4   :  { %3208 = vmatpush1.bf16.msra.mxu0 %v4460_v37  ;;  %3249 = vmatpush1.bf16.msra.mxu1 %v4596_v0  ;;  %v4532_v37 = vcombine.low %v1687_v25, %v1691_v26  ;;  %v4652_v0 = vcombine.low %v1807_v61, %v1811_v62 }
 0x1c5   :  { %3209 = vmatprep.subr.bf16.mxu0 %v4581_v40  ;;  %3250 = vmatprep.subr.bf16.mxu1 %v4589_v12  ;;  %v4525_v40 = vcombine.high %v1679_v33, %v1683_v34  ;;  %v1664_v33 = vld [vmem:[#allocation11 + $0x188] sm:$0xff] }
 0x1c6   :  { %v1668_v34 = vld [vmem:[#allocation11 + $0x1a8] sm:$0xff] }
 0x1c8   :  { %3210 = vmatpush2.bf16.msra.mxu0 %v4580_v47  ;;  %3251 = vmatpush1.bf16.msra.mxu1 %v4588_v11  ;;  %v4685_v47 = vcombine.high %v1839_v41, %v1843_v42  ;;  %v4510_v41 = vcombine.low %v1664_v33, %v1668_v34 }
 0x1c9   :  { %3211 = vmatprep.subr.bf16.mxu0 %v4573_v50  ;;  %3252 = vmatprep.subr.bf16.mxu1 %v4709_v23  ;;  %v1835_v50 = vld [vmem:[#allocation11 + $0x6e0] sm:$0xff] }
 0x1ca   :  { %v4676_v51 = vcombine.low %v1831_v49, %v1835_v50  ;;  %v4677_v52 = vcombine.high %v1831_v49, %v1835_v50  ;;  %v1640_v49 = vld [vmem:[#allocation11 + $0xc8] sm:$0xff] }
 0x1cb   :  { %v1644_v50 = vld [vmem:[#allocation11 + $0xe8] sm:$0xff] }
 0x1cc   :  { %3212 = vmatpush2.bf16.msra.mxu0 %v4572_v55  ;;  %3253 = vmatpush2.bf16.msra.mxu1 %v4708_v22  ;;  %v4669_v55 = vcombine.high %v1823_v53, %v1827_v54  ;;  %v1632_v53 = vld [vmem:[#allocation11 + $0x88] sm:$0xff]  ;;  %v4486_v14 = vcombine.low %v1640_v49, %v1644_v50 }
 0x1cd   :  { %3213 = vmatprep.subr.bf16.mxu0 %v4565_v58  ;;  %3254 = vmatprep.subr.bf16.mxu1 %v4701_v31  ;;  %v1819_v58 = vld [vmem:[#allocation11 + $0x660] sm:$0xff]  ;;  %v1624_v54 = vld [vmem:[#allocation11 + $0x48] sm:$0xff] }
 0x1ce   :  { %v4661_v59 = vcombine.high %v1815_v57, %v1819_v58  ;;  %v4660_v60 = vcombine.low %v1815_v57, %v1819_v58  ;;  %v1616_v58 = vld [vmem:[#allocation11 + $0x8] sm:$0xff] }
 0x1d0   :  { %3214 = vmatpush2.bf16.msra.mxu0 %v4564_v63  ;;  %3255 = vmatpush2.bf16.msra.mxu1 %v4700_v30  ;;  %v4653_v63 = vcombine.high %v1807_v61, %v1811_v62  ;;  %v1736_v62 = vld [vmem:[#allocation11 + $0x3c8] sm:$0xff] }
 0x1d1   :  { %3215 = vmatprep.subr.bf16.mxu0 %v4557_v2  ;;  %3256 = vmatprep.subr.bf16.mxu1 %v4693_v39  ;;  %v5536_v2 = vld [vmem:[#allocation11 + $0x5e8] sm:$0xff] }
 0x1d2   :  { %v4647_v3 = vcombine.high %v5534_v1, %v5536_v2  ;;  %v4646_v43 = vcombine.low %v5534_v1, %v5536_v2  ;;  %v1656_v39 = vld [vmem:[#allocation11 + $0x148] sm:$0xff] }
 0x1d4   :  { %3216 = vmatpush2.bf16.msra.mxu0 %v4556_v10  ;;  %3257 = vmatpush2.bf16.msra.mxu1 %v4692_v38  ;;  %v774_v10 = vrot.slane %v5542_v4, %v5509_v8  ;;  %v4511_v38 = vcombine.high %v1664_v33, %v1668_v34  ;;  %v1688_v33 = vld [vmem:[#allocation11 + $0x248] sm:$0xff] }
 0x1d5   :  { %3217 = vmatprep.subr.bf16.mxu0 %v4549_v15  ;;  %3258 = vmatprep.subr.bf16.mxu1 %v4685_v47  ;;  %v1692_v34 = vld [vmem:[#allocation11 + $0x268] sm:$0xff] }
 0x1d8   :  { %3218 = vmatpush2.bf16.msra.mxu0 %v4548_v21  ;;  %3259 = vmatpush2.bf16.msra.mxu1 %v4684_v46  ;;  %v1652_v46 = vld [vmem:[#allocation11 + $0x128] sm:$0xff] }
 0x1d9   :  { %3219 = vmatprep.subr.bf16.mxu0 %v4541_v24  ;;  %3260 = vmatprep.subr.bf16.mxu1 %v4677_v52  ;;  %v4487_v52 = vcombine.high %v1640_v49, %v1644_v50 }
 0x1dc   :  { %3220 = vmatpush2.bf16.msra.mxu0 %v4540_v29  ;;  %3261 = vmatpush2.bf16.msra.mxu1 %v4676_v51 }
 0x1dd   :  { %3221 = vmatprep.subr.bf16.mxu0 %v4533_v32  ;;  %3262 = vmatprep.subr.bf16.mxu1 %v4669_v55  ;;  %v1628_v55 = vld [vmem:[#allocation11 + $0x68] sm:$0xff] }
 0x1de   :  { %v4471_v57 = vcombine.high %v1624_v54, %v1628_v55 }
 0x1e0   :  { %3222 = vmatpush2.bf16.msra.mxu0 %v4532_v37  ;;  %3263 = vmatpush2.bf16.msra.mxu1 %v4668_v56  ;;  %v4478_v56 = vcombine.low %v1632_v53, %v1636_v13 }
 0x1e1   :  { %3223 = vmatprep.subr.bf16.mxu0 %v4525_v40  ;;  %3264 = vmatprep.subr.bf16.mxu1 %v4661_v59  ;;  %v1660_v40 = vld [vmem:[#allocation11 + $0x168] sm:$0xff] }
 0x1e2   :  { %v4503_v42 = vcombine.high %v1656_v39, %v1660_v40  ;;  %v4502_v47 = vcombine.low %v1656_v39, %v1660_v40  ;;  %v1620_v59 = vld [vmem:[#allocation11 + $0x28] sm:$0xff] }
 0x1e3   :  { %v4463_v61 = vcombine.high %v1616_v58, %v1620_v59 }
 0x1e4   :  { %3224 = vmatpush2.bf16.msra.mxu0 %v4524_v45  ;;  %3265 = vmatpush2.bf16.msra.mxu1 %v4660_v60  ;;  %v1648_v45 = vld [vmem:[#allocation11 + $0x108] sm:$0xff]  ;;  %v4470_v60 = vcombine.low %v1624_v54, %v1628_v55  ;;  %v1673_v55 = vld [vmem:[#allocation11 + $0x1d0] sm:$0xff] }
 0x1e5   :  { %3279 = vmatprep.subr.bf16.mxu0 %v4519_v48  ;;  %3266 = vmatprep.subr.bf16.mxu1 %v4653_v63  ;;  %v4495_v48 = vcombine.high %v1648_v45, %v1652_v46  ;;  %v4494_v51 = vcombine.low %v1648_v45, %v1652_v46  ;;  %v1740_v63 = vld [vmem:[#allocation11 + $0x3e8] sm:$0xff]  ;;  %v4535_v45 = vcombine.high %v1688_v33, %v1692_v34 }
 0x1e8   :  { %3267 = vmatpush2.bf16.msra.mxu1 %v4652_v0  ;;  %v4462_v0 = vcombine.low %v1616_v58, %v1620_v59 }
 0x1e9   :  { %3322 = vmatprep.subr.bf16.mxu1 %v4647_v3  ;;  %v4583_v3 = vcombine.high %v1736_v62, %v1740_v63 }
 0x227   :  { %v1465_v11 = vpop.f32.mrf.mxu0  ;;  %v1508_v12 = vpop.f32.mrf.mxu1 }
 0x228   :  { %v1466_v19 = vadd.f32 %v1465_v11, %v774_v10  ;;  %v4582_v11 = vcombine.low %v1736_v62, %v1740_v63 }
 0x229   :  { %v1467_v15 = vpop.f32.mrf.mxu0  ;;  %v1510_v16 = vpop.f32.mrf.mxu1 }
 0x22a   :  { %v1468_v17 = vadd.f32 %v1467_v15, %v778_v44  ;;  %v1509_v27 = vadd.f32 %v1508_v12, %v1466_v19  ;;  %v1720_v15 = vld [vmem:[#allocation11 + $0x348] sm:$0xff] }
 0x22b   :  { %v1469_v20 = vpop.f32.mrf.mxu0  ;;  %v1512_v21 = vpop.f32.mrf.mxu1 }
 0x22c   :  { %v1470_v22 = vadd.f32 %v1469_v20, %v774_v10  ;;  %v1511_v24 = vadd.f32 %v1510_v16, %v1468_v17  ;;  %v1603_v35 = vmax.f32 %v1509_v27, 0.0  ;;  %v1732_v10 = vld [vmem:[#allocation11 + $0x3a8] sm:$0xff] }
 0x22d   :  { %v1471_v23 = vpop.f32.mrf.mxu0  ;;  %v1514_v28 = vpop.f32.mrf.mxu1  ;;  %v1724_v16 = vld [vmem:[#allocation11 + $0x368] sm:$0xff] }
 0x22e   :  { %v1513_v25 = vadd.f32 %v1512_v21, %v1470_v22  ;;  %v1472_v26 = vadd.f32 %v1471_v23, %v778_v44  ;;  %v1604_v31 = vmax.f32 %v1511_v24, 0.0  ;;  %v1728_v44 = vld [vmem:[#allocation11 + $0x388] sm:$0xff]  ;;  %v4567_v19 = vcombine.high %v1720_v15, %v1724_v16 }
 0x22f   :  { %v4575_v12 = vcombine.high %v1728_v44, %v1732_v10  ;;  %v4574_v17 = vcombine.low %v1728_v44, %v1732_v10  ;;  %v1712_v20 = vld [vmem:[#allocation11 + $0x308] sm:$0xff]  ;;  %v4566_v22 = vcombine.low %v1720_v15, %v1724_v16 }
 0x230   :  { %v1515_v29 = vadd.f32 %v1514_v28, %v1472_v26  ;;  %v1607_v30 = vmax.f32 %v1513_v25, 0.0  ;;  %v1716_v21 = vld [vmem:[#allocation11 + $0x328] sm:$0xff] }
 0x231   :  { %v4559_v23 = vcombine.high %v1712_v20, %v1716_v21  ;;  %v1704_v24 = vld [vmem:[#allocation11 + $0x2c8] sm:$0xff]  ;;  %v4558_v26 = vcombine.low %v1712_v20, %v1716_v21 }
 0x232   :  { %v1608_v32 = vmax.f32 %v1515_v29, 0.0  ;;  %v5550_v37 = vpack.c.bf16 %v1607_v30, %v1603_v35  ;;  %v1708_v25 = vld [vmem:[#allocation11 + $0x2e8] sm:$0xff]  ;;  %v782_v35 = vrot.slane %v5542_v4, %v5512_v9 }
 0x233   :  { %v4551_v27 = vcombine.high %v1704_v24, %v1708_v25  ;;  %v1696_v28 = vld [vmem:[#allocation11 + $0x288] sm:$0xff]  ;;  %v4550_v30 = vcombine.low %v1704_v24, %v1708_v25  ;;  %v1661_v24 = vld [vmem:[#allocation11 + $0x170] sm:$0xff] }
 0x234   :  { %v5548_v36 = vpack.c.bf16 %v1608_v32, %v1604_v31  ;;  %v1700_v29 = vld [vmem:[#allocation11 + $0x2a8] sm:$0xff]  ;;  %v786_v32 = vrot.slane %v5542_v4, %v5506_v7 }
 0x235   :  { %v4543_v31 = vcombine.high %v1696_v28, %v1700_v29  ;;  %v4542_v40 = vcombine.low %v1696_v28, %v1700_v29  ;;  %v1796_v10 = vld [vmem:[#allocation11 + $0x5a8] sm:$0xff] }
 0x236   :  { %3225 = vmatprep.mubr.bf16.mxu0 %v5548_v36  ;;  %v1784_v21 = vld [vmem:[#allocation11 + $0x548] sm:$0xff] }
 0x237   :  { %3226 = vmatmul.mubr.bf16.vlgmr.msra.gmra.mxu0 %v5550_v37  ;;  %v1776_v29 = vld [vmem:[#allocation11 + $0x508] sm:$0xff] }
 0x238   :  { %3280 = vmatpush1.bf16.msra.mxu0 %v4518_v18  ;;  %3311 = vmatprep.mubr.bf16.mxu0 %v5548_v36  ;;  %v4479_v18 = vcombine.high %v1632_v53, %v1636_v13  ;;  %v4534_v53 = vcombine.low %v1688_v33, %v1692_v34  ;;  %v1768_v34 = vld [vmem:[#allocation11 + $0x4c8] sm:$0xff] }
 0x239   :  { %3281 = vmatprep.subr.bf16.mxu0 %v4511_v38 }
 0x23c   :  { %3282 = vmatpush1.bf16.msra.mxu0 %v4510_v41 }
 0x23d   :  { %3283 = vmatprep.subr.bf16.mxu0 %v4503_v42 }
 0x240   :  { %3284 = vmatpush1.bf16.msra.mxu0 %v4502_v47  ;;  %v1680_v47 = vld [vmem:[#allocation11 + $0x208] sm:$0xff] }
 0x241   :  { %3285 = vmatprep.subr.bf16.mxu0 %v4495_v48  ;;  %v1684_v48 = vld [vmem:[#allocation11 + $0x228] sm:$0xff] }
 0x242   :  { %v4527_v4 = vcombine.high %v1680_v47, %v1684_v48 }
 0x244   :  { %3286 = vmatpush1.bf16.msra.mxu0 %v4494_v51 }
 0x245   :  { %3287 = vmatprep.subr.bf16.mxu0 %v4487_v52 }
 0x248   :  { %3288 = vmatpush1.bf16.msra.mxu0 %v4486_v14 }
 0x249   :  { %3289 = vmatprep.subr.bf16.mxu0 %v4479_v18 }
 0x24c   :  { %3290 = vmatpush1.bf16.msra.mxu0 %v4478_v56  ;;  %v1677_v56 = vld [vmem:[#allocation11 + $0x1f0] sm:$0xff] }
 0x24d   :  { %3291 = vmatprep.subr.bf16.mxu0 %v4471_v57  ;;  %v4521_v62 = vcombine.high %v1673_v55, %v1677_v56 }
 0x250   :  { %3292 = vmatpush1.bf16.msra.mxu0 %v4470_v60  ;;  %v4526_v60 = vcombine.low %v1680_v47, %v1684_v48  ;;  %v1764_v47 = vld [vmem:[#allocation11 + $0x4a8] sm:$0xff]  ;;  %v1633_v48 = vld [vmem:[#allocation11 + $0x90] sm:$0xff] }
 0x251   :  { %3293 = vmatprep.subr.bf16.mxu0 %v4463_v61 }
 0x254   :  { %3294 = vmatpush1.bf16.msra.mxu0 %v4462_v0 }
 0x255   :  { %3295 = vmatprep.subr.bf16.mxu0 %v4583_v3  ;;  %v1792_v3 = vld [vmem:[#allocation11 + $0x588] sm:$0xff] }
 0x256   :  { %v4638_v25 = vcombine.low %v1792_v3, %v1796_v10 }
 0x258   :  { %3296 = vmatpush2.bf16.msra.mxu0 %v4582_v11  ;;  %v1665_v11 = vld [vmem:[#allocation11 + $0x190] sm:$0xff] }
 0x259   :  { %3297 = vmatprep.subr.bf16.mxu0 %v4575_v12  ;;  %v1669_v12 = vld [vmem:[#allocation11 + $0x1b0] sm:$0xff] }
 0x25a   :  { %v4513_v20 = vcombine.high %v1665_v11, %v1669_v12 }
 0x25c   :  { %3298 = vmatpush2.bf16.msra.mxu0 %v4574_v17  ;;  %v4520_v17 = vcombine.low %v1673_v55, %v1677_v56 }
 0x25d   :  { %3299 = vmatprep.subr.bf16.mxu0 %v4567_v19  ;;  %v4639_v19 = vcombine.high %v1792_v3, %v1796_v10  ;;  %v1868_v10 = vld [vmem:[#allocation11 + $0x7e8] sm:$0xff] }
 0x260   :  { %3300 = vmatpush2.bf16.msra.mxu0 %v4566_v22  ;;  %v1788_v22 = vld [vmem:[#allocation11 + $0x568] sm:$0xff] }
 0x261   :  { %3301 = vmatprep.subr.bf16.mxu0 %v4559_v23  ;;  %v1657_v23 = vld [vmem:[#allocation11 + $0x150] sm:$0xff]  ;;  %v4630_v33 = vcombine.low %v1784_v21, %v1788_v22 }
 0x262   :  { %v4505_v28 = vcombine.high %v1657_v23, %v1661_v24  ;;  %v4504_v1 = vcombine.low %v1657_v23, %v1661_v24  ;;  %v1860_v23 = vld [vmem:[#allocation11 + $0x7a8] sm:$0xff]  ;;  %v1729_v24 = vld [vmem:[#allocation11 + $0x390] sm:$0xff] }
 0x264   :  { %3302 = vmatpush2.bf16.msra.mxu0 %v4558_v26  ;;  %v4512_v26 = vcombine.low %v1665_v11, %v1669_v12  ;;  %v1737_v11 = vld [vmem:[#allocation11 + $0x3d0] sm:$0xff] }
 0x265   :  { %3303 = vmatprep.subr.bf16.mxu0 %v4551_v27  ;;  %v4631_v27 = vcombine.high %v1784_v21, %v1788_v22  ;;  %v1741_v12 = vld [vmem:[#allocation11 + $0x3f0] sm:$0xff]  ;;  %v1856_v22 = vld [vmem:[#allocation11 + $0x788] sm:$0xff] }
 0x266   :  { %v4585_v21 = vcombine.high %v1737_v11, %v1741_v12 }
 0x267   :  { %v1551_v38 = vpop.f32.mrf.mxu0  ;;  %v1594_v39 = vpop.f32.mrf.mxu1 }
 0x268   :  { %3304 = vmatpush2.bf16.msra.mxu0 %v4550_v30  ;;  %v1552_v49 = vadd.f32 %v1551_v38, %v782_v35  ;;  %v1780_v30 = vld [vmem:[#allocation11 + $0x528] sm:$0xff]  ;;  %v1641_v38 = vld [vmem:[#allocation11 + $0xd0] sm:$0xff] }
 0x269   :  { %v1553_v41 = vpop.f32.mrf.mxu0  ;;  %v1596_v42 = vpop.f32.mrf.mxu1  ;;  %3305 = vmatprep.subr.bf16.mxu0 %v4543_v31  ;;  %v1649_v31 = vld [vmem:[#allocation11 + $0x110] sm:$0xff]  ;;  %v4623_v2 = vcombine.high %v1776_v29, %v1780_v30 }
 0x26a   :  { %v1554_v46 = vadd.f32 %v1553_v41, %v786_v32  ;;  %v1595_v57 = vadd.f32 %v1594_v39, %v1552_v49  ;;  %v1645_v39 = vld [vmem:[#allocation11 + $0xf0] sm:$0xff] }
 0x26b   :  { %v1555_v50 = vpop.f32.mrf.mxu0  ;;  %v1598_v51 = vpop.f32.mrf.mxu1  ;;  %v1637_v49 = vld [vmem:[#allocation11 + $0xb0] sm:$0xff] }
 0x26c   :  { %v1556_v52 = vadd.f32 %v1555_v50, %v782_v35  ;;  %3306 = vmatpush2.bf16.msra.mxu0 %v4542_v40  ;;  %v1597_v14 = vadd.f32 %v1596_v42, %v1554_v46  ;;  %v1605_v44 = vmax.f32 %v1595_v57, 0.0  ;;  %v1772_v35 = vld [vmem:[#allocation11 + $0x4e8] sm:$0xff]  ;;  %v4622_v40 = vcombine.low %v1776_v29, %v1780_v30 }
 0x26d   :  { %v1557_v13 = vpop.f32.mrf.mxu0  ;;  %3307 = vmatprep.subr.bf16.mxu0 %v4535_v45  ;;  %v1600_v58 = vpop.f32.mrf.mxu1  ;;  %v4615_v42 = vcombine.high %v1768_v34, %v1772_v35  ;;  %v4489_v45 = vcombine.high %v1641_v38, %v1645_v39  ;;  %v1760_v46 = vld [vmem:[#allocation11 + $0x488] sm:$0xff]  ;;  %v4614_v50 = vcombine.low %v1768_v34, %v1772_v35  ;;  %v4480_v55 = vcombine.low %v1633_v48, %v1637_v49 }
 0x26e   :  { %v1599_v18 = vadd.f32 %v1598_v51, %v1556_v52  ;;  %v1558_v54 = vadd.f32 %v1557_v13, %v786_v32  ;;  %v1606_v63 = vmax.f32 %v1597_v14, 0.0  ;;  %v1653_v32 = vld [vmem:[#allocation11 + $0x130] sm:$0xff]  ;;  %v4488_v51 = vcombine.low %v1641_v38, %v1645_v39  ;;  %v1752_v13 = vld [vmem:[#allocation11 + $0x448] sm:$0xff] }
 0x26f   :  { %v4496_v41 = vcombine.low %v1649_v31, %v1653_v32  ;;  %v4607_v52 = vcombine.high %v1760_v46, %v1764_v47  ;;  %v1625_v14 = vld [vmem:[#allocation11 + $0x50] sm:$0xff]  ;;  %v1848_v30 = vld [vmem:[#allocation11 + $0x748] sm:$0xff] }
 0x270   :  { %v1601_v59 = vadd.f32 %v1600_v58, %v1558_v54  ;;  %3308 = vmatpush2.bf16.msra.mxu0 %v4534_v53  ;;  %v1609_v61 = vmax.f32 %v1599_v18, 0.0  ;;  %v4481_v53 = vcombine.high %v1633_v48, %v1637_v49  ;;  %v1629_v18 = vld [vmem:[#allocation11 + $0x70] sm:$0xff]  ;;  %v4606_v54 = vcombine.low %v1760_v46, %v1764_v47  ;;  %v1744_v58 = vld [vmem:[#allocation11 + $0x408] sm:$0xff] }
 0x271   :  { %3309 = vmatprep.subr.bf16.mxu0 %v4527_v4  ;;  %v1756_v4 = vld [vmem:[#allocation11 + $0x468] sm:$0xff]  ;;  %v4473_v57 = vcombine.high %v1625_v14, %v1629_v18  ;;  %v1713_v39 = vld [vmem:[#allocation11 + $0x310] sm:$0xff] }
 0x272   :  { %v1610_v0 = vmax.f32 %v1601_v59, 0.0  ;;  %v5564_v16 = vpack.c.bf16 %v1609_v61, %v1605_v44  ;;  %v4599_v56 = vcombine.high %v1752_v13, %v1756_v4  ;;  %v1748_v59 = vld [vmem:[#allocation11 + $0x428] sm:$0xff]  ;;  %v1621_v61 = vld [vmem:[#allocation11 + $0x30] sm:$0xff] }
 0x273   :  { %v1864_v44 = vld [vmem:[#allocation11 + $0x7c8] sm:$0xff]  ;;  %v1705_v49 = vld [vmem:[#allocation11 + $0x2d0] sm:$0xff] }
 0x274   :  { %v5562_v15 = vpack.c.bf16 %v1610_v0, %v1606_v63  ;;  %3310 = vmatpush2.bf16.msra.mxu0 %v4526_v60  ;;  %v1617_v60 = vld [vmem:[#allocation11 + $0x10] sm:$0xff]  ;;  %v4472_v63 = vcombine.low %v1625_v14, %v1629_v18  ;;  %v4591_v0 = vcombine.high %v1744_v58, %v1748_v59  ;;  %v1840_v35 = vld [vmem:[#allocation11 + $0x708] sm:$0xff] }
 0x275   :  { %3365 = vmatprep.subr.bf16.mxu0 %v4521_v62  ;;  %v4598_v62 = vcombine.low %v1752_v13, %v1756_v4  ;;  %v4465_v3 = vcombine.high %v1617_v60, %v1621_v61  ;;  %v1844_v38 = vld [vmem:[#allocation11 + $0x728] sm:$0xff]  ;;  %v1697_v18 = vld [vmem:[#allocation11 + $0x290] sm:$0xff] }
 0x276   :  { %3268 = vmatprep.mubr.bf16.mxu1 %v5562_v15  ;;  %v1832_v47 = vld [vmem:[#allocation11 + $0x6c8] sm:$0xff] }
 0x277   :  { %3269 = vmatmul.mubr.bf16.vlgmr.msra.gmra.mxu1 %v5564_v16  ;;  %3312 = vmatmul.mubr.bf16.vlgmr.msra.gmra.mxu0 %v5550_v37  ;;  %v1836_v48 = vld [vmem:[#allocation11 + $0x6e8] sm:$0xff] }
 0x278   :  { %3323 = vmatpush1.bf16.msra.mxu1 %v4646_v43  ;;  %3354 = vmatprep.mubr.bf16.mxu1 %v5562_v15  ;;  %v4497_v43 = vcombine.high %v1649_v31, %v1653_v32  ;;  %v1852_v31 = vld [vmem:[#allocation11 + $0x768] sm:$0xff]  ;;  %v1721_v32 = vld [vmem:[#allocation11 + $0x350] sm:$0xff] }
 0x279   :  { %3366 = vmatpush1.bf16.msra.mxu0 %v4520_v17  ;;  %3397 = vmatprep.mubr.bf16.mxu0 %v5548_v36  ;;  %v4590_v17 = vcombine.low %v1744_v58, %v1748_v59  ;;  %v1824_v4 = vld [vmem:[#allocation11 + $0x688] sm:$0xff] }
 0x27a   :  { %3324 = vmatprep.subr.bf16.mxu1 %v4639_v19  ;;  %3367 = vmatprep.subr.bf16.mxu0 %v4513_v20  ;;  %v4464_v19 = vcombine.low %v1617_v60, %v1621_v61  ;;  %v4711_v20 = vcombine.high %v1864_v44, %v1868_v10  ;;  %v1828_v14 = vld [vmem:[#allocation11 + $0x6a8] sm:$0xff]  ;;  %v1689_v61 = vld [vmem:[#allocation11 + $0x250] sm:$0xff] }
 0x27b   :  { %v1816_v59 = vld [vmem:[#allocation11 + $0x648] sm:$0xff] }
 0x27c   :  { %3325 = vmatpush1.bf16.msra.mxu1 %v4638_v25  ;;  %v1733_v25 = vld [vmem:[#allocation11 + $0x3b0] sm:$0xff]  ;;  %v1820_v60 = vld [vmem:[#allocation11 + $0x668] sm:$0xff] }
 0x27d   :  { %3368 = vmatpush1.bf16.msra.mxu0 %v4512_v26  ;;  %3326 = vmatprep.subr.bf16.mxu1 %v4631_v27  ;;  %v4710_v26 = vcombine.low %v1864_v44, %v1868_v10  ;;  %v4584_v27 = vcombine.low %v1737_v11, %v1741_v12  ;;  %v4577_v29 = vcombine.high %v1729_v24, %v1733_v25  ;;  %v1808_v10 = vld [vmem:[#allocation11 + $0x608] sm:$0xff]  ;;  %v1681_v12 = vld [vmem:[#allocation11 + $0x210] sm:$0xff] }
 0x27e   :  { %3369 = vmatprep.subr.bf16.mxu0 %v4505_v28  ;;  %v4703_v28 = vcombine.high %v1856_v22, %v1860_v23  ;;  %v1812_v11 = vld [vmem:[#allocation11 + $0x628] sm:$0xff] }
 0x280   :  { %3327 = vmatpush1.bf16.msra.mxu1 %v4630_v33  ;;  %v1725_v33 = vld [vmem:[#allocation11 + $0x370] sm:$0xff] }
 0x281   :  { %3370 = vmatpush1.bf16.msra.mxu0 %v4504_v1  ;;  %3328 = vmatprep.subr.bf16.mxu1 %v4623_v2  ;;  %v4702_v1 = vcombine.low %v1856_v22, %v1860_v23  ;;  %v4576_v2 = vcombine.low %v1729_v24, %v1733_v25  ;;  %v4569_v34 = vcombine.high %v1721_v32, %v1725_v33  ;;  %v1801_v23 = vld [vmem:[#allocation11 + $0x5d0] sm:$0xff]  ;;  %v1674_v25 = vld [vmem:[#allocation11 + $0x1d8] sm:$0xff] }
 0x282   :  { %3371 = vmatprep.subr.bf16.mxu0 %v4497_v43  ;;  %v4695_v43 = vcombine.high %v1848_v30, %v1852_v31  ;;  %v1805_v24 = vld [vmem:[#allocation11 + $0x5f0] sm:$0xff] }
 0x284   :  { %3329 = vmatpush1.bf16.msra.mxu1 %v4622_v40  ;;  %v1717_v40 = vld [vmem:[#allocation11 + $0x330] sm:$0xff] }
 0x285   :  { %3372 = vmatpush1.bf16.msra.mxu0 %v4496_v41  ;;  %3330 = vmatprep.subr.bf16.mxu1 %v4615_v42  ;;  %v4694_v41 = vcombine.low %v1848_v30, %v1852_v31  ;;  %v4568_v42 = vcombine.low %v1721_v32, %v1725_v33  ;;  %v4561_v46 = vcombine.high %v1713_v39, %v1717_v40  ;;  %v1793_v31 = vld [vmem:[#allocation11 + $0x590] sm:$0xff] }
 0x286   :  { %3373 = vmatprep.subr.bf16.mxu0 %v4489_v45  ;;  %v4687_v45 = vcombine.high %v1840_v35, %v1844_v38  ;;  %v1797_v32 = vld [vmem:[#allocation11 + $0x5b0] sm:$0xff]  ;;  %v4648_v33 = vcombine.low %v1801_v23, %v1805_v24 }
 0x288   :  { %3331 = vmatpush1.bf16.msra.mxu1 %v4614_v50  ;;  %v1709_v50 = vld [vmem:[#allocation11 + $0x2f0] sm:$0xff] }
 0x289   :  { %3374 = vmatpush1.bf16.msra.mxu0 %v4488_v51  ;;  %3332 = vmatprep.subr.bf16.mxu1 %v4607_v52  ;;  %v4686_v51 = vcombine.low %v1840_v35, %v1844_v38  ;;  %v4560_v52 = vcombine.low %v1713_v39, %v1717_v40  ;;  %v4553_v13 = vcombine.high %v1705_v49, %v1709_v50  ;;  %v1785_v35 = vld [vmem:[#allocation11 + $0x550] sm:$0xff]  ;;  %v1658_v40 = vld [vmem:[#allocation11 + $0x158] sm:$0xff] }
 0x28a   :  { %3375 = vmatprep.subr.bf16.mxu0 %v4481_v53  ;;  %v4679_v53 = vcombine.high %v1832_v47, %v1836_v48  ;;  %v1789_v38 = vld [vmem:[#allocation11 + $0x570] sm:$0xff] }
 0x28c   :  { %3333 = vmatpush1.bf16.msra.mxu1 %v4606_v54  ;;  %v1701_v54 = vld [vmem:[#allocation11 + $0x2b0] sm:$0xff] }
 0x28d   :  { %3376 = vmatpush1.bf16.msra.mxu0 %v4480_v55  ;;  %3334 = vmatprep.subr.bf16.mxu1 %v4599_v56  ;;  %v4678_v55 = vcombine.low %v1832_v47, %v1836_v48  ;;  %v4552_v56 = vcombine.low %v1705_v49, %v1709_v50  ;;  %v4545_v58 = vcombine.high %v1697_v18, %v1701_v54  ;;  %v1777_v48 = vld [vmem:[#allocation11 + $0x510] sm:$0xff]  ;;  %v1650_v50 = vld [vmem:[#allocation11 + $0x118] sm:$0xff] }
 0x28e   :  { %3377 = vmatprep.subr.bf16.mxu0 %v4473_v57  ;;  %v4671_v57 = vcombine.high %v1824_v4, %v1828_v14  ;;  %v1781_v49 = vld [vmem:[#allocation11 + $0x530] sm:$0xff] }
 0x290   :  { %3335 = vmatpush1.bf16.msra.mxu1 %v4598_v62  ;;  %v1693_v62 = vld [vmem:[#allocation11 + $0x270] sm:$0xff] }
 0x291   :  { %3378 = vmatpush1.bf16.msra.mxu0 %v4472_v63  ;;  %3336 = vmatprep.subr.bf16.mxu1 %v4591_v0  ;;  %v4670_v63 = vcombine.low %v1824_v4, %v1828_v14  ;;  %v4544_v0 = vcombine.low %v1697_v18, %v1701_v54  ;;  %v4537_v44 = vcombine.high %v1689_v61, %v1693_v62  ;;  %v1769_v14 = vld [vmem:[#allocation11 + $0x4d0] sm:$0xff]  ;;  %v1642_v54 = vld [vmem:[#allocation11 + $0xd8] sm:$0xff] }
 0x292   :  { %3379 = vmatprep.subr.bf16.mxu0 %v4465_v3  ;;  %v4663_v3 = vcombine.high %v1816_v59, %v1820_v60  ;;  %v1773_v18 = vld [vmem:[#allocation11 + $0x4f0] sm:$0xff] }
 0x294   :  { %3337 = vmatpush1.bf16.msra.mxu1 %v4590_v17  ;;  %v1685_v17 = vld [vmem:[#allocation11 + $0x230] sm:$0xff] }
 0x295   :  { %3380 = vmatpush1.bf16.msra.mxu0 %v4464_v19  ;;  %3338 = vmatprep.subr.bf16.mxu1 %v4711_v20  ;;  %v4662_v19 = vcombine.low %v1816_v59, %v1820_v60  ;;  %v4536_v20 = vcombine.low %v1689_v61, %v1693_v62  ;;  %v4529_v22 = vcombine.high %v1681_v12, %v1685_v17  ;;  %v1761_v59 = vld [vmem:[#allocation11 + $0x490] sm:$0xff]  ;;  %v1634_v61 = vld [vmem:[#allocation11 + $0x98] sm:$0xff] }
 0x296   :  { %3381 = vmatprep.subr.bf16.mxu0 %v4585_v21  ;;  %v4655_v21 = vcombine.high %v1808_v10, %v1812_v11  ;;  %v1765_v60 = vld [vmem:[#allocation11 + $0x4b0] sm:$0xff]  ;;  %v1638_v62 = vld [vmem:[#allocation11 + $0xb8] sm:$0xff] }
 0x298   :  { %3339 = vmatpush2.bf16.msra.mxu1 %v4710_v26  ;;  %v1678_v26 = vld [vmem:[#allocation11 + $0x1f8] sm:$0xff] }
 0x299   :  { %3382 = vmatpush2.bf16.msra.mxu0 %v4584_v27  ;;  %3340 = vmatprep.subr.bf16.mxu1 %v4703_v28  ;;  %v4654_v27 = vcombine.low %v1808_v10, %v1812_v11  ;;  %v4528_v28 = vcombine.low %v1681_v12, %v1685_v17  ;;  %v4523_v30 = vcombine.high %v1674_v25, %v1678_v26  ;;  %v1753_v10 = vld [vmem:[#allocation11 + $0x450] sm:$0xff]  ;;  %v1626_v12 = vld [vmem:[#allocation11 + $0x58] sm:$0xff] }
 0x29a   :  { %3383 = vmatprep.subr.bf16.mxu0 %v4577_v29  ;;  %v4649_v29 = vcombine.high %v1801_v23, %v1805_v24  ;;  %v1757_v11 = vld [vmem:[#allocation11 + $0x470] sm:$0xff]  ;;  %v1630_v17 = vld [vmem:[#allocation11 + $0x78] sm:$0xff] }
 0x29b   :  { %v1745_v23 = vld [vmem:[#allocation11 + $0x410] sm:$0xff] }
 0x29c   :  { %3341 = vmatpush2.bf16.msra.mxu1 %v4702_v1  ;;  %v1666_v1 = vld [vmem:[#allocation11 + $0x198] sm:$0xff]  ;;  %v1749_v24 = vld [vmem:[#allocation11 + $0x430] sm:$0xff] }
 0x29d   :  { %3384 = vmatpush2.bf16.msra.mxu0 %v4576_v2  ;;  %3342 = vmatprep.subr.bf16.mxu1 %v4695_v43  ;;  %v1670_v2 = vld [vmem:[#allocation11 + $0x1b8] sm:$0xff]  ;;  %v4522_v43 = vcombine.low %v1674_v25, %v1678_v26 }
 0x29e   :  { %3385 = vmatprep.subr.bf16.mxu0 %v4569_v34  ;;  %v4641_v34 = vcombine.high %v1793_v31, %v1797_v32  ;;  %v4515_v39 = vcombine.high %v1666_v1, %v1670_v2  ;;  %v1618_v25 = vld [vmem:[#allocation11 + $0x18] sm:$0xff] }
 0x29f   :  { %v1622_v26 = vld [vmem:[#allocation11 + $0x38] sm:$0xff] }
 0x2a0   :  { %3343 = vmatpush2.bf16.msra.mxu1 %v4694_v41  ;;  %v1662_v41 = vld [vmem:[#allocation11 + $0x178] sm:$0xff] }
 0x2a1   :  { %3386 = vmatpush2.bf16.msra.mxu0 %v4568_v42  ;;  %3344 = vmatprep.subr.bf16.mxu1 %v4687_v45  ;;  %v4640_v42 = vcombine.low %v1793_v31, %v1797_v32  ;;  %v4514_v45 = vcombine.low %v1666_v1, %v1670_v2  ;;  %v4507_v47 = vcombine.high %v1658_v40, %v1662_v41  ;;  %v1865_v31 = vld [vmem:[#allocation11 + $0x7d0] sm:$0xff]  ;;  %v1742_v1 = vld [vmem:[#allocation11 + $0x3f8] sm:$0xff] }
 0x2a2   :  { %3387 = vmatprep.subr.bf16.mxu0 %v4561_v46  ;;  %v4633_v46 = vcombine.high %v1785_v35, %v1789_v38  ;;  %v1869_v32 = vld [vmem:[#allocation11 + $0x7f0] sm:$0xff]  ;;  %v4592_v2 = vcombine.low %v1745_v23, %v1749_v24 }
 0x2a4   :  { %3345 = vmatpush2.bf16.msra.mxu1 %v4686_v51  ;;  %v1654_v51 = vld [vmem:[#allocation11 + $0x138] sm:$0xff] }
 0x2a5   :  { %3388 = vmatpush2.bf16.msra.mxu0 %v4560_v52  ;;  %3346 = vmatprep.subr.bf16.mxu1 %v4679_v53  ;;  %v4632_v52 = vcombine.low %v1785_v35, %v1789_v38  ;;  %v4506_v53 = vcombine.low %v1658_v40, %v1662_v41  ;;  %v4499_v4 = vcombine.high %v1650_v50, %v1654_v51  ;;  %v1857_v38 = vld [vmem:[#allocation11 + $0x790] sm:$0xff]  ;;  %v1730_v40 = vld [vmem:[#allocation11 + $0x398] sm:$0xff] }
 0x2a6   :  { %3389 = vmatprep.subr.bf16.mxu0 %v4553_v13  ;;  %v4625_v13 = vcombine.high %v1777_v48, %v1781_v49  ;;  %v1734_v41 = vld [vmem:[#allocation11 + $0x3b8] sm:$0xff] }
 0x2a8   :  { %3347 = vmatpush2.bf16.msra.mxu1 %v4678_v55  ;;  %v1646_v55 = vld [vmem:[#allocation11 + $0xf8] sm:$0xff] }
 0x2a9   :  { %3390 = vmatpush2.bf16.msra.mxu0 %v4552_v56  ;;  %3348 = vmatprep.subr.bf16.mxu1 %v4671_v57  ;;  %v4498_v56 = vcombine.low %v1650_v50, %v1654_v51  ;;  %v4617_v57 = vcombine.high %v1769_v14, %v1773_v18  ;;  %v1722_v50 = vld [vmem:[#allocation11 + $0x358] sm:$0xff] }
 0x2aa   :  { %3391 = vmatprep.subr.bf16.mxu0 %v4545_v58  ;;  %v4491_v58 = vcombine.high %v1642_v54, %v1646_v55  ;;  %v1726_v51 = vld [vmem:[#allocation11 + $0x378] sm:$0xff] }
 0x2ac   :  { %3349 = vmatpush2.bf16.msra.mxu1 %v4670_v63  ;;  %v4616_v63 = vcombine.low %v1769_v14, %v1773_v18  ;;  %v1841_v14 = vld [vmem:[#allocation11 + $0x710] sm:$0xff] }
 0x2ad   :  { %3392 = vmatpush2.bf16.msra.mxu0 %v4544_v0  ;;  %3350 = vmatprep.subr.bf16.mxu1 %v4663_v3  ;;  %v4490_v0 = vcombine.low %v1642_v54, %v1646_v55  ;;  %v4609_v3 = vcombine.high %v1761_v59, %v1765_v60  ;;  %v1845_v18 = vld [vmem:[#allocation11 + $0x730] sm:$0xff]  ;;  %v1714_v54 = vld [vmem:[#allocation11 + $0x318] sm:$0xff] }
 0x2ae   :  { %3393 = vmatprep.subr.bf16.mxu0 %v4537_v44  ;;  %v4483_v44 = vcombine.high %v1634_v61, %v1638_v62  ;;  %v1718_v55 = vld [vmem:[#allocation11 + $0x338] sm:$0xff] }
 0x2b0   :  { %3351 = vmatpush2.bf16.msra.mxu1 %v4662_v19  ;;  %v4608_v19 = vcombine.low %v1761_v59, %v1765_v60  ;;  %v1833_v59 = vld [vmem:[#allocation11 + $0x6d0] sm:$0xff] }
 0x2b1   :  { %3394 = vmatpush2.bf16.msra.mxu0 %v4536_v20  ;;  %3352 = vmatprep.subr.bf16.mxu1 %v4655_v21  ;;  %v4482_v20 = vcombine.low %v1634_v61, %v1638_v62  ;;  %v4601_v21 = vcombine.high %v1753_v10, %v1757_v11  ;;  %v1837_v60 = vld [vmem:[#allocation11 + $0x6f0] sm:$0xff]  ;;  %v1706_v61 = vld [vmem:[#allocation11 + $0x2d8] sm:$0xff] }
 0x2b2   :  { %3395 = vmatprep.subr.bf16.mxu0 %v4529_v22  ;;  %v4475_v22 = vcombine.high %v1626_v12, %v1630_v17  ;;  %v1710_v62 = vld [vmem:[#allocation11 + $0x2f8] sm:$0xff] }
 0x2b4   :  { %3353 = vmatpush2.bf16.msra.mxu1 %v4654_v27  ;;  %v4600_v27 = vcombine.low %v1753_v10, %v1757_v11  ;;  %v1825_v10 = vld [vmem:[#allocation11 + $0x690] sm:$0xff] }
 0x2b5   :  { %3396 = vmatpush2.bf16.msra.mxu0 %v4528_v28  ;;  %3408 = vmatprep.subr.bf16.mxu1 %v4649_v29  ;;  %v4474_v28 = vcombine.low %v1626_v12, %v1630_v17  ;;  %v4593_v29 = vcombine.high %v1745_v23, %v1749_v24  ;;  %v1829_v11 = vld [vmem:[#allocation11 + $0x6b0] sm:$0xff]  ;;  %v1698_v12 = vld [vmem:[#allocation11 + $0x298] sm:$0xff] }
 0x2b6   :  { %3451 = vmatprep.subr.bf16.mxu0 %v4523_v30  ;;  %v4467_v30 = vcombine.high %v1618_v25, %v1622_v26  ;;  %v1702_v17 = vld [vmem:[#allocation11 + $0x2b8] sm:$0xff]  ;;  %v1817_v23 = vld [vmem:[#allocation11 + $0x650] sm:$0xff] }
 0x2b7   :  { %3355 = vmatmul.mubr.bf16.vlgmr.msra.gmra.mxu1 %v5564_v16  ;;  %v1821_v24 = vld [vmem:[#allocation11 + $0x670] sm:$0xff] }
 0x2b8   :  { %3398 = vmatmul.mubr.bf16.vlgmr.msra.gmra.mxu0 %v5550_v37  ;;  %3409 = vmatpush1.bf16.msra.mxu1 %v4648_v33  ;;  %v1738_v33 = vld [vmem:[#allocation11 + $0x3d8] sm:$0xff] }
 0x2b9   :  { %3440 = vmatprep.mubr.bf16.mxu1 %v5562_v15  ;;  %3452 = vmatpush1.bf16.msra.mxu0 %v4522_v43  ;;  %v4466_v43 = vcombine.low %v1618_v25, %v1622_v26  ;;  %v4587_v35 = vcombine.high %v1738_v33, %v1742_v1  ;;  %v1690_v25 = vld [vmem:[#allocation11 + $0x258] sm:$0xff] }
 0x2ba   :  { %3483 = vmatprep.mubr.bf16.mxu0 %v5548_v36  ;;  %3410 = vmatprep.subr.bf16.mxu1 %v4641_v34  ;;  %v4624_v36 = vcombine.low %v1777_v48, %v1781_v49  ;;  %v4713_v34 = vcombine.high %v1865_v31, %v1869_v32  ;;  %v1849_v48 = vld [vmem:[#allocation11 + $0x750] sm:$0xff]  ;;  %v1694_v26 = vld [vmem:[#allocation11 + $0x278] sm:$0xff] }
 0x2bb   :  { %3453 = vmatprep.subr.bf16.mxu0 %v4515_v39  ;;  %v1861_v39 = vld [vmem:[#allocation11 + $0x7b0] sm:$0xff] }
 0x2bc   :  { %3411 = vmatpush1.bf16.msra.mxu1 %v4640_v42  ;;  %v4712_v42 = vcombine.low %v1865_v31, %v1869_v32  ;;  %v1853_v49 = vld [vmem:[#allocation11 + $0x770] sm:$0xff] }
 0x2bd   :  { %3454 = vmatpush1.bf16.msra.mxu0 %v4514_v45  ;;  %3412 = vmatprep.subr.bf16.mxu1 %v4633_v46  ;;  %v4586_v45 = vcombine.low %v1738_v33, %v1742_v1  ;;  %v4705_v46 = vcombine.high %v1857_v38, %v1861_v39  ;;  %v1809_v31 = vld [vmem:[#allocation11 + $0x610] sm:$0xff]  ;;  %v1682_v33 = vld [vmem:[#allocation11 + $0x218] sm:$0xff] }
 0x2be   :  { %3455 = vmatprep.subr.bf16.mxu0 %v4507_v47  ;;  %v4579_v47 = vcombine.high %v1730_v40, %v1734_v41  ;;  %v1813_v32 = vld [vmem:[#allocation11 + $0x630] sm:$0xff]  ;;  %v1686_v1 = vld [vmem:[#allocation11 + $0x238] sm:$0xff] }
 0x2c0   :  { %3413 = vmatpush1.bf16.msra.mxu1 %v4632_v52  ;;  %v4704_v52 = vcombine.low %v1857_v38, %v1861_v39  ;;  %v1802_v38 = vld [vmem:[#allocation11 + $0x5d8] sm:$0xff] }
 0x2c1   :  { %3456 = vmatpush1.bf16.msra.mxu0 %v4506_v53  ;;  %3414 = vmatprep.subr.bf16.mxu1 %v4625_v13  ;;  %v4578_v53 = vcombine.low %v1730_v40, %v1734_v41  ;;  %v4697_v13 = vcombine.high %v1849_v48, %v1853_v49  ;;  %v1806_v39 = vld [vmem:[#allocation11 + $0x5f8] sm:$0xff]  ;;  %v4656_v40 = vcombine.low %v1809_v31, %v1813_v32 }
 0x2c2   :  { %3457 = vmatprep.subr.bf16.mxu0 %v4499_v4  ;;  %v4571_v4 = vcombine.high %v1722_v50, %v1726_v51  ;;  %v4530_v41 = vcombine.low %v1682_v33, %v1686_v1 }
 0x2c4   :  { %3415 = vmatpush1.bf16.msra.mxu1 %v4624_v36  ;;  %v4696_v36 = vcombine.low %v1849_v48, %v1853_v49  ;;  %v4650_v48 = vcombine.low %v1802_v38, %v1806_v39 }
 0x2c5   :  { %3458 = vmatpush1.bf16.msra.mxu0 %v4498_v56  ;;  %3416 = vmatprep.subr.bf16.mxu1 %v4617_v57  ;;  %v4570_v56 = vcombine.low %v1722_v50, %v1726_v51  ;;  %v4689_v57 = vcombine.high %v1841_v14, %v1845_v18  ;;  %v1786_v50 = vld [vmem:[#allocation11 + $0x558] sm:$0xff] }
 0x2c6   :  { %3459 = vmatprep.subr.bf16.mxu0 %v4491_v58  ;;  %v4563_v58 = vcombine.high %v1714_v54, %v1718_v55  ;;  %v1790_v51 = vld [vmem:[#allocation11 + $0x578] sm:$0xff] }
 0x2c8   :  { %3417 = vmatpush1.bf16.msra.mxu1 %v4616_v63  ;;  %v4688_v63 = vcombine.low %v1841_v14, %v1845_v18  ;;  %v1778_v14 = vld [vmem:[#allocation11 + $0x518] sm:$0xff] }
 0x2c9   :  { %3460 = vmatpush1.bf16.msra.mxu0 %v4490_v0  ;;  %3418 = vmatprep.subr.bf16.mxu1 %v4609_v3  ;;  %v4562_v0 = vcombine.low %v1714_v54, %v1718_v55  ;;  %v4681_v3 = vcombine.high %v1833_v59, %v1837_v60  ;;  %v1782_v18 = vld [vmem:[#allocation11 + $0x538] sm:$0xff]  ;;  %v5179_v54 = vld [vmem:[#allocation13 + $0x30] sm:$0xff]   ;;  %v5180_v55 = vld [vmem:[#allocation13 + $0x68] sm:$0xff]  }
 0x2ca   :  { %3461 = vmatprep.subr.bf16.mxu0 %v4483_v44  ;;  %v4555_v44 = vcombine.high %v1706_v61, %v1710_v62 }
 0x2cc   :  { %3419 = vmatpush1.bf16.msra.mxu1 %v4608_v19  ;;  %v4680_v19 = vcombine.low %v1833_v59, %v1837_v60  ;;  %v5182_v59 = vld [vmem:[#allocation13 + $0x60] sm:$0xff]  }
 0x2cd   :  { %3462 = vmatpush1.bf16.msra.mxu0 %v4482_v20  ;;  %3420 = vmatprep.subr.bf16.mxu1 %v4601_v21  ;;  %v4554_v20 = vcombine.low %v1706_v61, %v1710_v62  ;;  %v4673_v21 = vcombine.high %v1825_v10, %v1829_v11  ;;  %v1762_v61 = vld [vmem:[#allocation11 + $0x498] sm:$0xff] }
 0x2ce   :  { %3463 = vmatprep.subr.bf16.mxu0 %v4475_v22  ;;  %v4547_v22 = vcombine.high %v1698_v12, %v1702_v17  ;;  %v1766_v62 = vld [vmem:[#allocation11 + $0x4b8] sm:$0xff] }
 0x2d0   :  { %3421 = vmatpush1.bf16.msra.mxu1 %v4600_v27  ;;  %v4672_v27 = vcombine.low %v1825_v10, %v1829_v11  ;;  %v1754_v10 = vld [vmem:[#allocation11 + $0x458] sm:$0xff] }
 0x2d1   :  { %3464 = vmatpush1.bf16.msra.mxu0 %v4474_v28  ;;  %3422 = vmatprep.subr.bf16.mxu1 %v4593_v29  ;;  %v4546_v28 = vcombine.low %v1698_v12, %v1702_v17  ;;  %v4665_v29 = vcombine.high %v1817_v23, %v1821_v24  ;;  %v1758_v11 = vld [vmem:[#allocation11 + $0x478] sm:$0xff]  ;;  %v5186_v17 = vld [vmem:[#allocation13 + $0x50] sm:$0xff]  }
 0x2d2   :  { %3465 = vmatprep.subr.bf16.mxu0 %v4467_v30  ;;  %v4539_v30 = vcombine.high %v1690_v25, %v1694_v26  ;;  %v5185_v12 = vld [vmem:[#allocation13 + $0x18] sm:$0xff]  }
 0x2d4   :  { %3423 = vmatpush1.bf16.msra.mxu1 %v4592_v2  ;;  %v4664_v2 = vcombine.low %v1817_v23, %v1821_v24  ;;  %v5187_v23 = vld [vmem:[#allocation13 + $0x10] sm:$0xff]   ;;  %v5188_v24 = vld [vmem:[#allocation13 + $0x48] sm:$0xff]  }
 0x2d5   :  { %3466 = vmatpush1.bf16.msra.mxu0 %v4466_v43  ;;  %3424 = vmatprep.subr.bf16.mxu1 %v4713_v34  ;;  %v4538_v43 = vcombine.low %v1690_v25, %v1694_v26  ;;  %v4657_v34 = vcombine.high %v1809_v31, %v1813_v32  ;;  %v4602_v25 = vcombine.low %v1754_v10, %v1758_v11 }
 0x2d6   :  { %3467 = vmatprep.subr.bf16.mxu0 %v4587_v35  ;;  %v4531_v35 = vcombine.high %v1682_v33, %v1686_v1  ;;  %v1858_v33 = vld [vmem:[#allocation11 + $0x798] sm:$0xff] }
 0x2d7   :  { %v1862_v1 = vld [vmem:[#allocation11 + $0x7b8] sm:$0xff] }
 0x2d8   :  { %3425 = vmatpush2.bf16.msra.mxu1 %v4712_v42  ;;  %v4651_v42 = vcombine.high %v1802_v38, %v1806_v39  ;;  %v1850_v38 = vld [vmem:[#allocation11 + $0x758] sm:$0xff] }
 0x2d9   :  { %3468 = vmatpush2.bf16.msra.mxu0 %v4586_v45  ;;  %3426 = vmatprep.subr.bf16.mxu1 %v4705_v46  ;;  %v1794_v45 = vld [vmem:[#allocation11 + $0x598] sm:$0xff] }
 0x2da   :  { %3469 = vmatprep.subr.bf16.mxu0 %v4579_v47  ;;  %v1798_v46 = vld [vmem:[#allocation11 + $0x5b8] sm:$0xff] }
 0x2db   :  { %v5176_v47 = vld [vmem:[#allocation13 + $0x78] sm:$0xff]   ;;  %v4643_v49 = vcombine.high %v1794_v45, %v1798_v46 }
 0x2dc   :  { %3427 = vmatpush2.bf16.msra.mxu1 %v4704_v52  ;;  %v5177_v52 = vld [vmem:[#allocation13 + $0x38] sm:$0xff]  }
 0x2dd   :  { %3470 = vmatpush2.bf16.msra.mxu0 %v4578_v53  ;;  %3428 = vmatprep.subr.bf16.mxu1 %v4697_v13  ;;  %v5178_v53 = vld [vmem:[#allocation13 + $0x70] sm:$0xff]   ;;  %v4642_v13 = vcombine.low %v1794_v45, %v1798_v46  ;;  %v1854_v39 = vld [vmem:[#allocation11 + $0x778] sm:$0xff] }
 0x2de   :  { %3471 = vmatprep.subr.bf16.mxu0 %v4571_v4  ;;  %v4635_v4 = vcombine.high %v1786_v50, %v1790_v51  ;;  %v1846_v45 = vld [vmem:[#allocation11 + $0x738] sm:$0xff]  ;;  %v4698_v46 = vcombine.low %v1850_v38, %v1854_v39 }
 0x2e0   :  { %3429 = vmatpush2.bf16.msra.mxu1 %v4696_v36  ;;  %v4634_v36 = vcombine.low %v1786_v50, %v1790_v51 }
 0x2e1   :  { %3472 = vmatpush2.bf16.msra.mxu0 %v4570_v56  ;;  %3430 = vmatprep.subr.bf16.mxu1 %v4689_v57  ;;  %v4627_v56 = vcombine.high %v1778_v14, %v1782_v18  ;;  %v1770_v57 = vld [vmem:[#allocation11 + $0x4d8] sm:$0xff] }
 0x2e2   :  { %3473 = vmatprep.subr.bf16.mxu0 %v4563_v58  ;;  %v1774_v58 = vld [vmem:[#allocation11 + $0x4f8] sm:$0xff] }
 0x2e3   :  { %v4619_v60 = vcombine.high %v1770_v57, %v1774_v58 }
 0x2e4   :  { %3431 = vmatpush2.bf16.msra.mxu1 %v4688_v63  ;;  %v5183_v63 = vld [vmem:[#allocation13 + $0x20] sm:$0xff]  }
 0x2e5   :  { %3474 = vmatpush2.bf16.msra.mxu0 %v4562_v0  ;;  %3432 = vmatprep.subr.bf16.mxu1 %v4681_v3  ;;  %v5184_v0 = vld [vmem:[#allocation13 + $0x58] sm:$0xff]   ;;  %v4618_v3 = vcombine.low %v1770_v57, %v1774_v58 }
 0x2e6   :  { %3475 = vmatprep.subr.bf16.mxu0 %v4555_v44  ;;  %v4611_v44 = vcombine.high %v1762_v61, %v1766_v62 }
 0x2e8   :  { %3433 = vmatpush2.bf16.msra.mxu1 %v4680_v19  ;;  %v4610_v19 = vcombine.low %v1762_v61, %v1766_v62  ;;  %v5584_v61 = vld [vmem:[%s5618_s6] sm:$0xff]  ;;  %v5193_v62 = vld [vmem:[#allocation13 + $0xb8] sm:$0xff]  }
 0x2e9   :  { %3476 = vmatpush2.bf16.msra.mxu0 %v4554_v20  ;;  %3434 = vmatprep.subr.bf16.mxu1 %v4673_v21  ;;  %v4603_v20 = vcombine.high %v1754_v10, %v1758_v11  ;;  %v1746_v21 = vld [vmem:[#allocation11 + $0x418] sm:$0xff]  ;;  %v5195_v11 = vld [vmem:[#allocation13 + $0xb0] sm:$0xff]  }
 0x2ea   :  { %3477 = vmatprep.subr.bf16.mxu0 %v4547_v22  ;;  %v1750_v22 = vld [vmem:[#allocation11 + $0x438] sm:$0xff] }
 0x2eb   :  { %v4595_v26 = vcombine.high %v1746_v21, %v1750_v22  ;;  %v4594_v31 = vcombine.low %v1746_v21, %v1750_v22 }
 0x2ec   :  { %3435 = vmatpush2.bf16.msra.mxu1 %v4672_v27  ;;  %v1866_v27 = vld [vmem:[#allocation11 + $0x7d8] sm:$0xff] }
 0x2ed   :  { %3478 = vmatpush2.bf16.msra.mxu0 %v4546_v28  ;;  %3436 = vmatprep.subr.bf16.mxu1 %v4665_v29  ;;  %v1870_v28 = vld [vmem:[#allocation11 + $0x7f8] sm:$0xff]  ;;  %v5189_v29 = vld [vmem:[#allocation13 + $0x8] sm:$0xff]  }
 0x2ee   :  { %3479 = vmatprep.subr.bf16.mxu0 %v4539_v30  ;;  %v5190_v30 = vld [vmem:[#allocation13 + $0x40] sm:$0xff]   ;;  %v4715_v32 = vcombine.high %v1866_v27, %v1870_v28 }
 0x2f0   :  { %3437 = vmatpush2.bf16.msra.mxu1 %v4664_v2  ;;  %v5191_v2 = vld [vmem:[#allocation13] sm:$0xff]  }
 0x2f1   :  { %3480 = vmatpush2.bf16.msra.mxu0 %v4538_v43  ;;  %3438 = vmatprep.subr.bf16.mxu1 %v4657_v34  ;;  %v5208_v43 = vld [vmem:[#allocation13 + $0x178] sm:$0xff]   ;;  %v4714_v34 = vcombine.low %v1866_v27, %v1870_v28 }
 0x2f2   :  { %3481 = vmatprep.subr.bf16.mxu0 %v4531_v35  ;;  %v4707_v35 = vcombine.high %v1858_v33, %v1862_v1 }
 0x2f4   :  { %3439 = vmatpush2.bf16.msra.mxu1 %v4656_v40  ;;  %v4706_v40 = vcombine.low %v1858_v33, %v1862_v1  ;;  %v5200_v1 = vld [vmem:[#allocation13 + $0xd8] sm:$0xff]  }
 0x2f5   :  { %3482 = vmatpush2.bf16.msra.mxu0 %v4530_v41  ;;  %3494 = vmatprep.subr.bf16.mxu1 %v4651_v42  ;;  %v4699_v41 = vcombine.high %v1850_v38, %v1854_v39  ;;  %v1842_v42 = vld [vmem:[#allocation11 + $0x718] sm:$0xff]  ;;  %v5202_v39 = vld [vmem:[#allocation13 + $0xd0] sm:$0xff]  }
 0x2f6   :  { %4781 = vmatprep.subr.bf16.mxu0 %v5176_v47  ;;  %v4691_v47 = vcombine.high %v1842_v42, %v1846_v45  ;;  %v4690_v50 = vcombine.low %v1842_v42, %v1846_v45  ;;  %v5201_v38 = vld [vmem:[#allocation13 + $0x98] sm:$0xff]   ;;  %v5203_v42 = vld [vmem:[#allocation13 + $0x90] sm:$0xff]   ;;  %v5204_v45 = vld [vmem:[#allocation13 + $0xc8] sm:$0xff]  }
 0x2f7   :  { %3441 = vmatmul.mubr.bf16.vlgmr.msra.gmra.mxu1 %v5564_v16  ;;  %v3227_v58 = vpop.f32.mrf.mxu0 }
 0x2f8   :  { %3484 = vmatmul.mubr.bf16.vlgmr.msra.gmra.mxu0 %v5550_v37  ;;  %3495 = vmatpush1.bf16.msra.mxu1 %v4650_v48  ;;  %v5181_v37 = vld [vmem:[#allocation13 + $0x28] sm:$0xff]   ;;  %v1834_v48 = vld [vmem:[#allocation11 + $0x6d8] sm:$0xff] }
 0x2f9   :  { %3526 = vmatprep.mubr.bf16.mxu1 %v5562_v15  ;;  %3496 = vmatprep.subr.bf16.mxu1 %v4643_v49  ;;  %v4626_v15 = vcombine.low %v1778_v14, %v1782_v18  ;;  %v1838_v49 = vld [vmem:[#allocation11 + $0x6f8] sm:$0xff] }
 0x2fa   :  { %4782 = vmatpush3.bf16.msra.mxu0 %v5177_v52  ;;  %v4683_v51 = vcombine.high %v1834_v48, %v1838_v49  ;;  %v1826_v52 = vld [vmem:[#allocation11 + $0x698] sm:$0xff] }
 0x2fb   :  { %4783 = vmatprep.subr.bf16.mxu0 %v5178_v53  ;;  %v1830_v53 = vld [vmem:[#allocation11 + $0x6b8] sm:$0xff] }
 0x2fc   :  { %3497 = vmatpush1.bf16.msra.mxu1 %v4642_v13  ;;  %v4682_v13 = vcombine.low %v1834_v48, %v1838_v49  ;;  %v1818_v14 = vld [vmem:[#allocation11 + $0x658] sm:$0xff]  ;;  %v5205_v48 = vld [vmem:[#allocation13 + $0x88] sm:$0xff]   ;;  %v5206_v49 = vld [vmem:[#allocation13 + $0xc0] sm:$0xff]  }
 0x2fd   :  { %3498 = vmatprep.subr.bf16.mxu1 %v4635_v4  ;;  %v4675_v4 = vcombine.high %v1826_v52, %v1830_v53  ;;  %v1822_v18 = vld [vmem:[#allocation11 + $0x678] sm:$0xff] }
 0x2fe   :  { %4784 = vmatpush3.bf16.msra.mxu0 %v5179_v54  ;;  %v4674_v54 = vcombine.low %v1826_v52, %v1830_v53  ;;  %v4666_v57 = vcombine.low %v1818_v14, %v1822_v18  ;;  %v5207_v52 = vld [vmem:[#allocation13 + $0x80] sm:$0xff]   ;;  %v5224_v53 = vld [vmem:[#allocation13 + $0x1f8] sm:$0xff]  }
 0x2ff   :  { %4785 = vmatprep.subr.bf16.mxu0 %v5180_v55  ;;  %v4667_v55 = vcombine.high %v1818_v14, %v1822_v18  ;;  %v5219_v14 = vld [vmem:[#allocation13 + $0x110] sm:$0xff]   ;;  %v5220_v18 = vld [vmem:[#allocation13 + $0x148] sm:$0xff]  }
 0x300   :  { %3499 = vmatpush1.bf16.msra.mxu1 %v4634_v36  ;;  %v1810_v36 = vld [vmem:[#allocation11 + $0x618] sm:$0xff] }
 0x301   :  { %3500 = vmatprep.subr.bf16.mxu1 %v4627_v56  ;;  %v1814_v56 = vld [vmem:[#allocation11 + $0x638] sm:$0xff] }
 0x302   :  { %4786 = vmatpush3.bf16.msra.mxu0 %v5181_v37  ;;  %v4659_v37 = vcombine.high %v1810_v36, %v1814_v56 }
 0x303   :  { %4787 = vmatprep.subr.bf16.mxu0 %v5182_v59  ;;  %v4658_v59 = vcombine.low %v1810_v36, %v1814_v56  ;;  %v5223_v36 = vld [vmem:[#allocation13 + $0x100] sm:$0xff]  }
 0x304   :  { %3501 = vmatpush1.bf16.msra.mxu1 %v4626_v15  ;;  %v3229_v15 = vpop.f32.mrf.mxu0 }
 0x305   :  { %3502 = vmatprep.subr.bf16.mxu1 %v4619_v60  ;;  %v5192_v60 = vld [vmem:[#allocation13 + $0xf8] sm:$0xff]  }
 0x306   :  { %4788 = vmatpush3.bf16.msra.mxu0 %v5183_v63  ;;  %v3231_v63 = vpop.f32.mrf.mxu0 }
 0x307   :  { %4789 = vmatprep.subr.bf16.mxu0 %v5184_v0  ;;  %v5194_v0 = vld [vmem:[#allocation13 + $0xf0] sm:$0xff]  }
 0x308   :  { %3503 = vmatpush1.bf16.msra.mxu1 %v4618_v3  ;;  %v1880_v3 = vrot.slane %v5584_v61, %v5503_v6  ;;  %v5197_v6 = vld [vmem:[#allocation13 + $0xa8] sm:$0xff]  }
 0x309   :  { %3504 = vmatprep.subr.bf16.mxu1 %v4611_v44  ;;  %v1876_v44 = vrot.slane %v5584_v61, %v5509_v8 }
 0x30a   :  { %4790 = vmatpush3.bf16.msra.mxu0 %v5185_v12  ;;  %v3233_v12 = vpop.f32.mrf.mxu0 }
 0x30b   :  { %4791 = vmatprep.subr.bf16.mxu0 %v5186_v17  ;;  %v3232_v21 = vadd.f32 %v3231_v63, %v1876_v44  ;;  %v3228_v22 = vadd.f32 %v3227_v58, %v1876_v44 }
 0x30c   :  { %3505 = vmatpush1.bf16.msra.mxu1 %v4610_v19  ;;  %v5196_v19 = vld [vmem:[#allocation13 + $0xe8] sm:$0xff]  }
 0x30d   :  { %3506 = vmatprep.subr.bf16.mxu1 %v4603_v20  ;;  %v3230_v20 = vadd.f32 %v3229_v15, %v1880_v3 }
 0x30e   :  { %4792 = vmatpush3.bf16.msra.mxu0 %v5187_v23 }
 0x30f   :  { %4793 = vmatprep.subr.bf16.mxu0 %v5188_v24  ;;  %v3234_v24 = vadd.f32 %v3233_v12, %v1880_v3 }
 0x310   :  { %3507 = vmatpush1.bf16.msra.mxu1 %v4602_v25 }
 0x311   :  { %3508 = vmatprep.subr.bf16.mxu1 %v4595_v26 }
 0x312   :  { %4794 = vmatpush3.bf16.msra.mxu0 %v5189_v29 }
 0x313   :  { %4795 = vmatprep.subr.bf16.mxu0 %v5190_v30 }
 0x314   :  { %3509 = vmatpush1.bf16.msra.mxu1 %v4594_v31 }
 0x315   :  { %3510 = vmatprep.subr.bf16.mxu1 %v4715_v32  ;;  %v5199_v32 = vld [vmem:[#allocation13 + $0xa0] sm:$0xff]  }
 0x316   :  { %4796 = vmatpush3.bf16.msra.mxu0 %v5191_v2 }
 0x317   :  { %4825 = vmatprep.subr.bf16.mxu0 %v5208_v43  ;;  %v5209_v43 = vld [vmem:[#allocation13 + $0x138] sm:$0xff]  }
 0x318   :  { %3511 = vmatpush2.bf16.msra.mxu1 %v4714_v34 }
 0x319   :  { %3512 = vmatprep.subr.bf16.mxu1 %v4707_v35  ;;  %v5210_v35 = vld [vmem:[#allocation13 + $0x170] sm:$0xff]  }
 0x31c   :  { %3513 = vmatpush2.bf16.msra.mxu1 %v4706_v40  ;;  %v5211_v40 = vld [vmem:[#allocation13 + $0x130] sm:$0xff]  }
 0x31d   :  { %3514 = vmatprep.subr.bf16.mxu1 %v4699_v41  ;;  %v5212_v41 = vld [vmem:[#allocation13 + $0x168] sm:$0xff]  }
 0x320   :  { %3515 = vmatpush2.bf16.msra.mxu1 %v4698_v46  ;;  %v5213_v46 = vld [vmem:[#allocation13 + $0x128] sm:$0xff]  }
 0x321   :  { %3516 = vmatprep.subr.bf16.mxu1 %v4691_v47  ;;  %v5214_v47 = vld [vmem:[#allocation13 + $0x160] sm:$0xff]  }
 0x324   :  { %3517 = vmatpush2.bf16.msra.mxu1 %v4690_v50  ;;  %v5215_v50 = vld [vmem:[#allocation13 + $0x120] sm:$0xff]  }
 0x325   :  { %3518 = vmatprep.subr.bf16.mxu1 %v4683_v51  ;;  %v5216_v51 = vld [vmem:[#allocation13 + $0x158] sm:$0xff]  }
 0x328   :  { %3519 = vmatpush2.bf16.msra.mxu1 %v4682_v13  ;;  %v5217_v13 = vld [vmem:[#allocation13 + $0x118] sm:$0xff]  }
 0x329   :  { %3520 = vmatprep.subr.bf16.mxu1 %v4675_v4  ;;  %v5218_v4 = vld [vmem:[#allocation13 + $0x150] sm:$0xff]  }
 0x32c   :  { %3521 = vmatpush2.bf16.msra.mxu1 %v4674_v54  ;;  %v5221_v54 = vld [vmem:[#allocation13 + $0x108] sm:$0xff]  }
 0x32d   :  { %3522 = vmatprep.subr.bf16.mxu1 %v4667_v55  ;;  %v5222_v55 = vld [vmem:[#allocation13 + $0x140] sm:$0xff]  }
 0x330   :  { %3523 = vmatpush2.bf16.msra.mxu1 %v4666_v57 }
 0x331   :  { %3524 = vmatprep.subr.bf16.mxu1 %v4659_v37  ;;  %v1888_v37 = vrot.slane %v5584_v61, %v5506_v7 }
 0x334   :  { %3525 = vmatpush2.bf16.msra.mxu1 %v4658_v59  ;;  %v1884_v59 = vrot.slane %v5584_v61, %v5512_v9 }
 0x335   :  { %4803 = vmatprep.subr.bf16.mxu1 %v5192_v60 }
 0x337   :  { %3527 = vmatmul.mubr.bf16.vlgmr.msra.gmra.mxu1 %v5564_v16  ;;  %v3270_v10 = vpop.f32.mrf.mxu1  ;;  %v5198_v16 = vld [vmem:[#allocation13 + $0xe0] sm:$0xff]   ;;  %v3313_v56 = vpop.f32.mrf.mxu0 }
 0x338   :  { %4804 = vmatpush3.bf16.msra.mxu1 %v5193_v62  ;;  %v3271_v27 = vadd.f32 %v3270_v10, %v3228_v22  ;;  %v3314_v3 = vadd.f32 %v3313_v56, %v1884_v59 }
 0x339   :  { %v3272_v17 = vpop.f32.mrf.mxu1  ;;  %4805 = vmatprep.subr.bf16.mxu1 %v5194_v0  ;;  %v3315_v57 = vpop.f32.mrf.mxu0 }
 0x33a   :  { %v3273_v25 = vadd.f32 %v3272_v17, %v3230_v20  ;;  %v3537_v33 = vmax.f32 %v3271_v27, 0.0  ;;  %v3316_v63 = vadd.f32 %v3315_v57, %v1888_v37  ;;  %v5228_v27 = vld [vmem:[#allocation13 + $0x1e8] sm:$0xff]  }
 0x33b   :  { %v3274_v23 = vpop.f32.mrf.mxu1  ;;  %v3317_v58 = vpop.f32.mrf.mxu0 }
 0x33c   :  { %v3275_v26 = vadd.f32 %v3274_v23, %v3232_v21  ;;  %4806 = vmatpush3.bf16.msra.mxu1 %v5195_v11  ;;  %v3538_v30 = vmax.f32 %v3273_v25, 0.0  ;;  %v3318_v0 = vadd.f32 %v3317_v58, %v1884_v59  ;;  %v5225_v25 = vld [vmem:[#allocation13 + $0x1b8] sm:$0xff]  }
 0x33d   :  { %v3276_v8 = vpop.f32.mrf.mxu1  ;;  %4807 = vmatprep.subr.bf16.mxu1 %v5196_v19  ;;  %v3319_v60 = vpop.f32.mrf.mxu0 }
 0x33e   :  { %v3277_v28 = vadd.f32 %v3276_v8, %v3234_v24  ;;  %v3545_v29 = vmax.f32 %v3275_v26, 0.0  ;;  %v3320_v10 = vadd.f32 %v3319_v60, %v1888_v37  ;;  %v5226_v26 = vld [vmem:[#allocation13 + $0x1f0] sm:$0xff]   ;;  %v5229_v8 = vld [vmem:[#allocation13 + $0x1a8] sm:$0xff]   ;;  %v1899_v60 = vsub.s32 6, %v5500_v5 }
 0x340   :  { %v3546_v31 = vmax.f32 %v3277_v28, 0.0  ;;  %4808 = vmatpush3.bf16.msra.mxu1 %v5197_v6  ;;  %v3553_v34 = vpack.c.bf16 %v3545_v29, %v3537_v33  ;;  %v5227_v6 = vld [vmem:[#allocation13 + $0x1b0] sm:$0xff]   ;;  %v5231_v28 = vld [vmem:[#allocation13 + $0x1a0] sm:$0xff]   ;;  %v5232_v29 = vld [vmem:[#allocation13 + $0x1d8] sm:$0xff]  }
 0x341   :  { %4809 = vmatprep.subr.bf16.mxu1 %v5198_v16  ;;  %v5230_v16 = vld [vmem:[#allocation13 + $0x1e0] sm:$0xff]   ;;  %v5236_v33 = vld [vmem:[#allocation13 + $0x1c8] sm:$0xff]  }
 0x342   :  { %v3554_v2 = vpack.c.bf16 %v3546_v31, %v3538_v30  ;;  %v5233_v30 = vld [vmem:[#allocation13 + $0x198] sm:$0xff]   ;;  %v5234_v31 = vld [vmem:[#allocation13 + $0x1d0] sm:$0xff]  }
 0x344   :  { %4112 = vmatprep.mubr.bf16.mxu0 %v3554_v2  ;;  %4810 = vmatpush3.bf16.msra.mxu1 %v5199_v32  ;;  %v5235_v32 = vld [vmem:[#allocation13 + $0x190] sm:$0xff]   ;;  %v5238_v2 = vld [vmem:[#allocation13 + $0x1c0] sm:$0xff]  }
 0x345   :  { %4113 = vmatmul.mubr.bf16.vlgmr.msra.gmra.mxu0 %v3553_v34  ;;  %4811 = vmatprep.subr.bf16.mxu1 %v5200_v1  ;;  %v5237_v1 = vld [vmem:[#allocation13 + $0x188] sm:$0xff]  }
 0x346   :  { %4826 = vmatpush3.bf16.msra.mxu0 %v5209_v43  ;;  %v5239_v43 = vld [vmem:[#allocation13 + $0x180] sm:$0xff]  }
 0x347   :  { %4827 = vmatprep.subr.bf16.mxu0 %v5210_v35 }
 0x348   :  { %4812 = vmatpush3.bf16.msra.mxu1 %v5201_v38  ;;  %v1895_v38 = vsub.s32 5, %v5500_v5 }
 0x349   :  { %4813 = vmatprep.subr.bf16.mxu1 %v5202_v39  ;;  %v1891_v39 = vsub.s32 4, %v5500_v5 }
 0x34a   :  { %4828 = vmatpush3.bf16.msra.mxu0 %v5211_v40 }
 0x34b   :  { %4829 = vmatprep.subr.bf16.mxu0 %v5212_v41  ;;  %v1896_v41 = vrot.slane %v5584_v61, %v1895_v38 }
 0x34c   :  { %4814 = vmatpush3.bf16.msra.mxu1 %v5203_v42  ;;  %v1892_v42 = vrot.slane %v5584_v61, %v1891_v39 }
 0x34d   :  { %4815 = vmatprep.subr.bf16.mxu1 %v5204_v45 }
 0x34e   :  { %4830 = vmatpush3.bf16.msra.mxu0 %v5213_v46 }
 0x34f   :  { %4831 = vmatprep.subr.bf16.mxu0 %v5214_v47 }
 0x350   :  { %4816 = vmatpush3.bf16.msra.mxu1 %v5205_v48 }
 0x351   :  { %4817 = vmatprep.subr.bf16.mxu1 %v5206_v49 }
 0x352   :  { %4832 = vmatpush3.bf16.msra.mxu0 %v5215_v50 }
 0x353   :  { %4833 = vmatprep.subr.bf16.mxu0 %v5216_v51 }
 0x354   :  { %4818 = vmatpush3.bf16.msra.mxu1 %v5207_v52 }
 0x355   :  { %4847 = vmatprep.subr.bf16.mxu1 %v5224_v53 }
 0x356   :  { %4834 = vmatpush3.bf16.msra.mxu0 %v5217_v13 }
 0x357   :  { %4835 = vmatprep.subr.bf16.mxu0 %v5218_v4 }
 0x35a   :  { %4836 = vmatpush3.bf16.msra.mxu0 %v5219_v14 }
 0x35b   :  { %4837 = vmatprep.subr.bf16.mxu0 %v5220_v18 }
 0x35e   :  { %4838 = vmatpush3.bf16.msra.mxu0 %v5221_v54 }
 0x35f   :  { %4839 = vmatprep.subr.bf16.mxu0 %v5222_v55 }
 0x362   :  { %4840 = vmatpush3.bf16.msra.mxu0 %v5223_v36 }
 0x377   :  { %v3356_v15 = vpop.f32.mrf.mxu1 }
 0x378   :  { %v3357_v17 = vadd.f32 %v3356_v15, %v3314_v3  ;;  %v3399_v34 = vpop.f32.mrf.mxu0  ;;  %v1903_v15 = vsub.s32 7, %v5500_v5 }
 0x379   :  { %v3358_v62 = vpop.f32.mrf.mxu1  ;;  %v3400_v50 = vadd.f32 %v3399_v34, %v1892_v42 }
 0x37a   :  { %v3359_v11 = vadd.f32 %v3358_v62, %v3316_v63  ;;  %v3539_v7 = vmax.f32 %v3357_v17, 0.0  ;;  %v3401_v35 = vpop.f32.mrf.mxu0  ;;  %v1904_v63 = vrot.slane %v5584_v61, %v1903_v15 }
 0x37b   :  { %v3360_v44 = vpop.f32.mrf.mxu1  ;;  %v3402_v48 = vadd.f32 %v3401_v35, %v1896_v41 }
 0x37c   :  { %v3361_v12 = vadd.f32 %v3360_v44, %v3318_v0  ;;  %v3540_v22 = vmax.f32 %v3359_v11, 0.0  ;;  %v3403_v40 = vpop.f32.mrf.mxu0  ;;  %v1900_v0 = vrot.slane %v5584_v61, %v1899_v60 }
 0x37d   :  { %v3362_v19 = vpop.f32.mrf.mxu1  ;;  %v3404_v49 = vadd.f32 %v3403_v40, %v1892_v42 }
 0x37e   :  { %v3363_v20 = vadd.f32 %v3362_v19, %v3320_v10  ;;  %v3547_v21 = vmax.f32 %v3361_v12, 0.0  ;;  %v3405_v46 = vpop.f32.mrf.mxu0 }
 0x37f   :  { %v3406_v52 = vadd.f32 %v3405_v46, %v1896_v41 }
 0x380   :  { %v3548_v23 = vmax.f32 %v3363_v20, 0.0  ;;  %v3555_v9 = vpack.c.bf16 %v3547_v21, %v3539_v7 }
 0x382   :  { %v3556_v24 = vpack.c.bf16 %v3548_v23, %v3540_v22 }
 0x384   :  { %4153 = vmatprep.mubr.bf16.mxu1 %v3556_v24 }
 0x385   :  { %4154 = vmatmul.mubr.bf16.vlgmr.msra.gmra.mxu1 %v3555_v9 }
 0x386   :  { %4848 = vmatpush3.bf16.msra.mxu1 %v5225_v25 }
 0x387   :  { %4849 = vmatprep.subr.bf16.mxu1 %v5226_v26 }
 0x38a   :  { %4850 = vmatpush3.bf16.msra.mxu1 %v5227_v6 }
 0x38b   :  { %4851 = vmatprep.subr.bf16.mxu1 %v5228_v27 }
 0x38e   :  { %4852 = vmatpush3.bf16.msra.mxu1 %v5229_v8 }
 0x38f   :  { %4853 = vmatprep.subr.bf16.mxu1 %v5230_v16 }
 0x392   :  { %4854 = vmatpush3.bf16.msra.mxu1 %v5231_v28 }
 0x393   :  { %4855 = vmatprep.subr.bf16.mxu1 %v5232_v29 }
 0x396   :  { %4856 = vmatpush3.bf16.msra.mxu1 %v5233_v30 }
 0x397   :  { %4857 = vmatprep.subr.bf16.mxu1 %v5234_v31 }
 0x39a   :  { %4858 = vmatpush3.bf16.msra.mxu1 %v5235_v32 }
 0x39b   :  { %4859 = vmatprep.subr.bf16.mxu1 %v5236_v33 }
 0x39e   :  { %4860 = vmatpush3.bf16.msra.mxu1 %v5237_v1 }
 0x39f   :  { %4861 = vmatprep.subr.bf16.mxu1 %v5238_v2  ;;  %v4716_v2 = vld [vmem:[%s5620_s8] ss:$0 sm:$0xff]  ;;  %s5425_s8 = smov [#allocation14]  }
 0x3a0   :  { %s4251_s26 = sshll.u32 %s5425_s8, 4  ;;  %s4252_s26 = int_to_ptr.vmem [resolvable:$true] %s4251_s26 }
 0x3a1   :  { %s5380_s27 = scalar_lea.vmem %s4252_s26, 256  ;;  %p5385_p8 = scmp.lt.s32.totalorder %s4252_s26, %s4252_s26 }
 0x3a2   :  { %4862 = vmatpush3.bf16.msra.mxu1 %v5239_v43  ;;  %p5381_p7 = scmp.ne.s32.totalorder %s4252_s26, %s5380_s27  ;;  %p5386_p9 = scmp.lt.s32.totalorder %s5380_s27, %s5380_s27 }
 0x3a4   :  { %p5387_p10 = por %p5386_p9, %p5385_p8 }
 0x3a6   :  { %p5388_p11 = pnand %p5387_p10, %p5381_p7 }
 0x3b7   :  { %v3442_v45 = vpop.f32.mrf.mxu1 }
 0x3b8   :  { %v3443_v4 = vadd.f32 %v3442_v45, %v3400_v50  ;;  %v3485_v37 = vpop.f32.mrf.mxu0 }
 0x3b9   :  { %v3444_v47 = vpop.f32.mrf.mxu1  ;;  %v3486_v17 = vadd.f32 %v3485_v37, %v1900_v0 }
 0x3ba   :  { %v3445_v53 = vadd.f32 %v3444_v47, %v3402_v48  ;;  %v3541_v56 = vmax.f32 %v3443_v4, 0.0  ;;  %v3487_v59 = vpop.f32.mrf.mxu0 }
 0x3bb   :  { %v3446_v51 = vpop.f32.mrf.mxu1  ;;  %v3488_v11 = vadd.f32 %v3487_v59, %v1904_v63 }
 0x3bc   :  { %v3447_v13 = vadd.f32 %v3446_v51, %v3404_v49  ;;  %v3542_v55 = vmax.f32 %v3445_v53, 0.0  ;;  %v3489_v62 = vpop.f32.mrf.mxu0 }
 0x3bd   :  { %v3448_v14 = vpop.f32.mrf.mxu1  ;;  %v3490_v12 = vadd.f32 %v3489_v62, %v1900_v0 }
 0x3be   :  { %v3449_v18 = vadd.f32 %v3448_v14, %v3406_v52  ;;  %v3549_v54 = vmax.f32 %v3447_v13, 0.0  ;;  %v3491_v44 = vpop.f32.mrf.mxu0 }
 0x3bf   :  { %v3492_v20 = vadd.f32 %v3491_v44, %v1904_v63 }
 0x3c0   :  { %v3550_v36 = vmax.f32 %v3449_v18, 0.0  ;;  %v3557_v58 = vpack.c.bf16 %v3549_v54, %v3541_v56 }
 0x3c2   :  { %v3558_v57 = vpack.c.bf16 %v3550_v36, %v3542_v55 }
 0x3c4   :  { %4194 = vmatprep.mubr.bf16.mxu0 %v3558_v57 }
 0x3c5   :  { %4195 = vmatmul.mubr.bf16.vlgmr.msra.gmra.mxu0 %v3557_v58 }
 0x3f7   :  { %v3528_v3 = vpop.f32.mrf.mxu1 }
 0x3f8   :  { %v3529_v23 = vadd.f32 %v3528_v3, %v3486_v17 }
 0x3f9   :  { %v3530_v10 = vpop.f32.mrf.mxu1 }
 0x3fa   :  { %v3531_v21 = vadd.f32 %v3530_v10, %v3488_v11  ;;  %v3543_v26 = vmax.f32 %v3529_v23, 0.0 }
 0x3fb   :  { %v3532_v19 = vpop.f32.mrf.mxu1 }
 0x3fc   :  { %v3533_v22 = vadd.f32 %v3532_v19, %v3490_v12  ;;  %v3544_v5 = vmax.f32 %v3531_v21, 0.0 }
 0x3fd   :  { %v3534_v7 = vpop.f32.mrf.mxu1 }
 0x3fe   :  { %v3535_v24 = vadd.f32 %v3534_v7, %v3492_v20  ;;  %v3551_v25 = vmax.f32 %v3533_v22, 0.0 }
 0x400   :  { %v3552_v9 = vmax.f32 %v3535_v24, 0.0  ;;  %v3559_v27 = vpack.c.bf16 %v3551_v25, %v3543_v26 }
 0x402   :  { %v3560_v6 = vpack.c.bf16 %v3552_v9, %v3544_v5 }
 0x404   :  { %4235 = vmatprep.mubr.bf16.mxu1 %v3560_v6 }
 0x405   :  { %4236 = vmatmul.mubr.bf16.vlgmr.msra.gmra.mxu1 %v3559_v27  ;;  %v4797_v61 = vpop.f32.mrf.mxu0 }
 0x407   :  { %v4798_v8 = vpop.f32.mrf.mxu0 }
 0x408   :  { %v4799_v1 = vadd.f32 %v4798_v8, %v4797_v61 }
 0x409   :  { %v4800_v16 = vpop.f32.mrf.mxu0 }
 0x40a   :  { %v4115_v38 = vadd.f32 %v4799_v1, %v4716_v2 }
 0x40b   :  { %v4801_v28 = vpop.f32.mrf.mxu0 }
 0x40c   :  { %v4802_v39 = vadd.f32 %v4801_v28, %v4800_v16 }
 0x40e   :  { %v4118_v48 = vadd.f32 %v4802_v39, %v4716_v2 }
 0x445   :  { %v4819_v29 = vpop.f32.mrf.mxu1 }
 0x447   :  { %v4820_v31 = vpop.f32.mrf.mxu1 }
 0x448   :  { %v4821_v34 = vadd.f32 %v4820_v31, %v4819_v29 }
 0x449   :  { %v4822_v33 = vpop.f32.mrf.mxu1 }
 0x44a   :  { %v4156_v45 = vadd.f32 %v4821_v34, %v4115_v38 }
 0x44b   :  { %v4823_v35 = vpop.f32.mrf.mxu1 }
 0x44c   :  { %v4824_v46 = vadd.f32 %v4823_v35, %v4822_v33 }
 0x44e   :  { %v4159_v53 = vadd.f32 %v4824_v46, %v4118_v48 }
 0x485   :  { %v4841_v30 = vpop.f32.mrf.mxu0 }
 0x487   :  { %v4842_v32 = vpop.f32.mrf.mxu0 }
 0x488   :  { %v4843_v40 = vadd.f32 %v4842_v32, %v4841_v30 }
 0x489   :  { %v4844_v43 = vpop.f32.mrf.mxu0 }
 0x48a   :  { %v4197_v49 = vadd.f32 %v4843_v40, %v4156_v45 }
 0x48b   :  { %v4845_v41 = vpop.f32.mrf.mxu0 }
 0x48c   :  { %v4846_v50 = vadd.f32 %v4845_v41, %v4844_v43 }
 0x48e   :  { %v4200_v14 = vadd.f32 %v4846_v50, %v4159_v53 }
 0x4c5   :  { %v4863_v42 = vpop.f32.mrf.mxu1 }
 0x4c7   :  { %v4864_v47 = vpop.f32.mrf.mxu1 }
 0x4c8   :  { %v4865_v51 = vadd.f32 %v4864_v47, %v4863_v42 }
 0x4c9   :  { %v4866_v52 = vpop.f32.mrf.mxu1 }
 0x4ca   :  { %v4238_v13 = vadd.f32 %v4865_v51, %v4197_v49 }
 0x4cb   :  { %v4867_v4 = vpop.f32.mrf.mxu1 }
 0x4cc   :  { %4244 = vst [vmem:[#allocation14] sm:$0xff] %v4238_v13  ;;  %v4868_v18 = vadd.f32 %v4867_v4, %v4866_v52 }
 0x4ce   :  { %v4241_v54 = vadd.f32 %v4868_v18, %v4200_v14 }
 0x4d0   :  { %4245 = vst [vmem:[#allocation14 + $0x8] sm:$0xff] %v4241_v54 }
 0x4d1   :  { %5391 = shalt.err (!%p5388_p11)
}
 0x4d2   :  { %4257 = dma.vmem_to_hbm [thread:$0]  %s4252_s26, 256, %s5621_s9, [#allocation4], %s5418_s3, %s5418_s3, %s5419_s30  }
 0x4d3   :  { %5408 = dma.done.wait [#allocation4], 256  }
 0x4d4   :  { %5409 = vsyncadd [#allocation4], 4294967040 }
 0x4d5   :  { %4261 = vsyncpa [#allocation3], 1 }
 0x4d6   :  { %4262 = vsyncpa [#allocation6], 1 }
 0x4d7   :  { %4263 = vsyncpa [#allocation9], 1 }
 0x4d8   :  { %4264 = vsyncpa [#allocation12], 1 }
 0x4d9   :  { %4265 = vsyncpa [#allocation4], 1 }

</bundles_post_ra>
